<compile_context>
chip_gen: v7x
topology: tpu7x:2x2x1
jax: 0.10.0
libtpu: 0.0.40
codegen_flags: <defaults>
</compile_context>

<pallas_src>
import math
import numpy as np

import jax
import jax.numpy as jnp
from jax.experimental import pallas as pl
from jax.experimental.pallas import tpu as pltpu

# DSS constants (piq defaults)
DCT_SIZE = 8
SIGMA_WEIGHT = 1.55
KERNEL_SIZE = 3
SIGMA_SIMILARITY = 1.5
PERCENTILE = 0.05
DC_COEFF = 1000.0
AC_COEFF = 300.0
WEIGHT_THRESHOLD = 1e-2


# ----------------------------------------------------------------------------
# Deterministic constant construction (numpy, trace-time only).
# ----------------------------------------------------------------------------
def _dct_matrix(n: int) -> np.ndarray:
    d = np.zeros((n, n), np.float64)
    d[0, :] = math.sqrt(1.0 / n)
    p = np.arange(1, n, dtype=np.float64)[:, None]
    q = np.arange(1, 2 * n, 2, dtype=np.float64)[None, :]
    d[1:, :] = math.sqrt(2.0 / n) * np.cos(math.pi / (2 * n) * p * q)
    return d.astype(np.float32)


def _gaussian_kernel(k: int, sigma: float) -> np.ndarray:
    coords = np.arange(k, dtype=np.float64) - (k - 1) / 2.0
    g = np.exp(-(coords[None, :] ** 2 + coords[:, None] ** 2) / (2.0 * sigma ** 2))
    g /= g.sum()
    return g.astype(np.float32)


def _gaussian_kernel_1d(k: int, sigma: float) -> np.ndarray:
    coords = np.arange(k, dtype=np.float64) - (k - 1) / 2.0
    g = np.exp(-(coords ** 2) / (2.0 * sigma ** 2))
    return g / g.sum()          # 2-D kernel == outer(g, g)


def _subband_weights() -> np.ndarray:
    cgrid = (np.arange(1, DCT_SIZE + 1, dtype=np.float64) - 0.5) ** 2
    return np.exp(-(cgrid[None, :] + cgrid[:, None]) / (2.0 * SIGMA_WEIGHT ** 2))


# ----------------------------------------------------------------------------
# Fused DSS kernel: block DCT + subband similarity maps for one image.
# ----------------------------------------------------------------------------
def _make_dss_kernel(s_kept: int, hb: int, wb: int, g1d: np.ndarray):
    hw = hb * wb
    g0, g1, g2 = float(g1d[0]), float(g1d[1]), float(g1d[2])

    def kernel(t_ref, x_ref, y_ref, left_ref, right_ref):
        # t_ref: (S, 64) kept-subband DCT operator (rows of D ⊗ D)
        # x_ref/y_ref: (1, 64, hw) block-ized luminance (block-pixel, block-pos)
        tk = t_ref[...]
        xb = x_ref[0]
        yb = y_ref[0]

        # Fused block DCT → per-subband spatial maps, already (S, hw). MXU.
        sx = jnp.dot(tk, xb, preferred_element_type=jnp.float32)
        sy = jnp.dot(tk, yb, preferred_element_type=jnp.float32)

        # Boundary masks for the flattened (hb, wb) maps (p = i*wb + j).
        lane = jax.lax.broadcasted_iota(jnp.int32, (1, hw), 1)
        col = lane % wb
        has_left = col != 0            # neighbour j-1 exists
        has_right = col != (wb - 1)    # neighbour j+1 exists

        def shift(a, d):
            # result[..., p] = a[..., p + d], zeros outside the map.
            if abs(d) >= hw:
                return jnp.zeros_like(a)
            rows = a.shape[0]
            if d > 0:
                return jnp.concatenate(
                    [a[:, d:], jnp.zeros((rows, d), jnp.float32)], axis=1)
            return jnp.concatenate(
                [jnp.zeros((rows, -d), jnp.float32), a[:, :hw + d]], axis=1)

        def blur(a):
            # Separable zero-padded 3x3 gaussian on flattened (hb, wb) maps.
            t = (g1 * a
                 + g0 * jnp.where(has_left, shift(a, -1), 0.0)
                 + g2 * jnp.where(has_right, shift(a, 1), 0.0))
            # Row shifts are whole-wb lane shifts; end zero-fill == zero pad.
            return g1 * t + g0 * shift(t, -wb) + g2 * shift(t, wb)

        mu_x = blur(sx)
        mu_y = blur(sy)
        sigma_xx = jnp.maximum(blur(sx * sx) - mu_x * mu_x, 0.0)
        sigma_yy = jnp.maximum(blur(sy * sy) - mu_y * mu_y, 0.0)

        # Per-subband DC/AC constant generated in-kernel (no HBM stream).
        row = jax.lax.broadcasted_iota(jnp.int32, (s_kept, 1), 0)
        c = jnp.where(row == 0, DC_COEFF, AC_COEFF)

        root = jnp.sqrt(sigma_xx * sigma_yy)
        left_ref[0] = (2.0 * root + c) * pl.reciprocal(
            sigma_xx + sigma_yy + c, approx=True)

        # Right term only for the DC subband (row 0 of the kept set).
        sigma_xy_dc = blur(sx[0:1] * sy[0:1]) - mu_x[0:1] * mu_y[0:1]
        right_ref[0] = (sigma_xy_dc + DC_COEFF) * pl.reciprocal(
            root[0:1] + DC_COEFF, approx=True)

    return kernel


def _dss_similarity_maps(tk, xb, yb, s_kept, hb, wb, g1d):
    b = xb.shape[0]
    nsub = DCT_SIZE * DCT_SIZE
    hw = hb * wb
    kernel = _make_dss_kernel(s_kept, hb, wb, g1d)
    return pl.pallas_call(
        kernel,
        out_shape=(
            jax.ShapeDtypeStruct((b, s_kept, hw), jnp.float32),
            jax.ShapeDtypeStruct((b, 1, hw), jnp.float32),
        ),
        grid=(b,),
        in_specs=[
            pl.BlockSpec((s_kept, nsub), lambda i: (0, 0)),      # tiny constant
            pl.BlockSpec((1, nsub, hw), lambda i: (i, 0, 0)),
            pl.BlockSpec((1, nsub, hw), lambda i: (i, 0, 0)),
        ],
        out_specs=(
            pl.BlockSpec((1, s_kept, hw), lambda i: (i, 0, 0)),
            pl.BlockSpec((1, 1, hw), lambda i: (i, 0, 0)),
        ),
        compiler_params=pltpu.CompilerParams(
            dimension_semantics=("parallel",),
            vmem_limit_bytes=32 * 1024 * 1024,
        ),
    )(tk, xb, yb)


# ----------------------------------------------------------------------------
# Full DSS forward (reduction='none').
# ----------------------------------------------------------------------------
def dss_pallas(ref, dist):
    b, ch, h, w = ref.shape
    x = ref.astype(jnp.float32) * 255.0
    y = dist.astype(jnp.float32) * 255.0

    if ch == 3:  # Y channel of YIQ (same as piq.rgb2yiq)[:, :1]
        xl = 0.299 * x[:, 0] + 0.587 * x[:, 1] + 0.114 * x[:, 2]
        yl = 0.299 * y[:, 0] + 0.587 * y[:, 1] + 0.114 * y[:, 2]
    else:
        xl = x[:, 0]
        yl = y[:, 0]

    rows = DCT_SIZE * (h // DCT_SIZE)
    cols = DCT_SIZE * (w // DCT_SIZE)
    xl = xl[:, :rows, :cols]
    yl = yl[:, :rows, :cols]
    hb, wb = rows // DCT_SIZE, cols // DCT_SIZE
    hw = hb * wb
    nsub = DCT_SIZE * DCT_SIZE

    # Static constants: fused 64x64 DCT operator restricted to kept subbands.
    d = _dct_matrix(DCT_SIZE)
    t_full = np.kron(d, d)                                 # (64, 64)
    weight = _subband_weights()
    mask = weight >= WEIGHT_THRESHOLD
    kept = np.nonzero(mask.reshape(-1))[0]                 # 17 subbands, DC first
    s_kept = int(kept.size)
    w_kept = weight.reshape(-1)[kept]
    w_sum = float(w_kept.sum())                            # others zeroed, as in piq
    tk = jnp.asarray(t_full[kept].astype(np.float32))      # (17, 64)
    g1d = _gaussian_kernel_1d(KERNEL_SIZE, SIGMA_SIMILARITY)

    # Block-ize: (B, rows, cols) -> (B, 64 block-pixels, hb*wb block-positions).
    def blockize(img):
        return (
            img.reshape(b, hb, DCT_SIZE, wb, DCT_SIZE)
            .transpose(0, 2, 4, 1, 3)
            .reshape(b, nsub, hw)
        )

    xb, yb = blockize(xl), blockize(yl)

    left, right = _dss_similarity_maps(tk, xb, yb, s_kept, hb, wb, g1d)

    # Percentile pooling of worst scores (top-k of the negated maps).
    k = max(1, int(round(PERCENTILE * hw)))
    neg_left, _ = jax.lax.top_k(-left, k)                  # (B, S, k) smallest of left
    sim = jnp.mean(-neg_left, axis=-1)                     # (B, S)
    neg_right, _ = jax.lax.top_k(-right[:, 0, :], k)       # DC subband only
    sim_right_dc = jnp.mean(-neg_right, axis=-1)           # (B,)
    sim = sim.at[:, 0].multiply(sim_right_dc)

    # Gaussian subband weighting (kept subbands only; others contribute zero).
    eps = float(np.finfo(np.float32).eps)
    wvec = jnp.asarray((w_kept / w_sum + eps).astype(np.float32))
    return jnp.sum(sim * wvec[None, :], axis=-1)           # (B,), reduction='none'


class MetricModel:
    """JAX/Pallas mirror of the PyTorch MetricModel."""

    lower_better = False

    def __call__(self, ref, dist):
        return dss_pallas(ref, dist)


# ----------------------------------------------------------------------------
# Pure numpy reference (for correctness checking only).
# ----------------------------------------------------------------------------
def _dss_reference_np(ref, dist):
    x = np.asarray(ref, np.float64) * 255.0
    y = np.asarray(dist, np.float64) * 255.0
    if x.shape[1] == 3:
        lw = np.array([0.299, 0.587, 0.114])
        xl = np.einsum("c,bchw->bhw", lw, x)
        yl = np.einsum("c,bchw->bhw", lw, y)
    else:
        xl, yl = x[:, 0], y[:, 0]
    b, h, w = xl.shape
    rows, cols = DCT_SIZE * (h // DCT_SIZE), DCT_SIZE * (w // DCT_SIZE)
    xl, yl = xl[:, :rows, :cols], yl[:, :rows, :cols]
    hb, wb = rows // DCT_SIZE, cols // DCT_SIZE

    d = _dct_matrix(DCT_SIZE).astype(np.float64)

    def block_dct(img):
        blk = img.reshape(b, hb, DCT_SIZE, wb, DCT_SIZE)
        out = np.einsum("mi,bpiqj,nj->bpmqn", d, blk, d)
        return out.reshape(b, rows, cols)

    dx, dy = block_dct(xl), block_dct(yl)
    g = _gaussian_kernel(KERNEL_SIZE, SIGMA_SIMILARITY).astype(np.float64)

    def conv(im):
        pad = KERNEL_SIZE // 2
        p = np.pad(im, ((0, 0), (pad, pad), (pad, pad)))
        out = np.zeros_like(im)
        for di in range(KERNEL_SIZE):
            for dj in range(KERNEL_SIZE):
                out += g[di, dj] * p[:, di : di + hb, dj : dj + wb]
        return out

    weight = _subband_weights().copy()
    sims = np.zeros((b, DCT_SIZE, DCT_SIZE))
    kidx = max(1, round(PERCENTILE * hb * wb))
    for m in range(DCT_SIZE):
        for n in range(DCT_SIZE):
            if weight[m, n] < WEIGHT_THRESHOLD:
                weight[m, n] = 0.0
                continue
            sxm, sym = dx[:, m::DCT_SIZE, n::DCT_SIZE], dy[:, m::DCT_SIZE, n::DCT_SIZE]
            c = DC_COEFF if (m == 0 and n == 0) else AC_COEFF
            mux, muy = conv(sxm), conv(sym)
            sxx = np.maximum(conv(sxm * sxm) - mux ** 2, 0.0)
            syy = np.maximum(conv(sym * sym) - muy ** 2, 0.0)
            left = (2.0 * np.sqrt(sxx * syy) + c) / (sxx + syy + c)
            sim = np.sort(left.reshape(b, -1), axis=1)[:, :kidx].mean(axis=1)
            if m == 0 and n == 0:
                sxy = conv(sxm * sym) - mux * muy
                right = (sxy + c) / (np.sqrt(sxx * syy) + c)
                sim = sim * np.sort(right.reshape(b, -1), axis=1)[:, :kidx].mean(axis=1)
            sims[:, m, n] = sim
    eps = np.finfo(np.float32).eps
    return np.sum(sims * (weight / weight.sum() + eps), axis=(1, 2))


# ----------------------------------------------------------------------------
if __name__ == "__main__":
    key = jax.random.PRNGKey(0)
    k1, k2 = jax.random.split(key)
    ref = jax.random.uniform(k1, (2, 3, 32, 32), dtype=jnp.float32)
    dist = jax.random.uniform(k2, (2, 3, 32, 32), dtype=jnp.float32)

    model = MetricModel()
    out = jax.jit(model.__call__)(ref, dist)
    out = jax.block_until_ready(out)

    expected = _dss_reference_np(np.asarray(ref), np.asarray(dist))
    out_np = np.asarray(out)
    assert out_np.shape == (2,)
    assert np.all(np.isfinite(out_np))
    if not np.allclose(out_np, expected, rtol=2e-2, atol=2e-2):
        raise AssertionError(f"mismatch: pallas={out_np} reference={expected}")
    print("KERNEL_OK")
</pallas_src>

<mosaic_0001>
module attributes {stable_mosaic.version = 11 : i64} {
  func.func @kernel(%arg0: i32, %arg1: memref<17x64xf32, #tpu.memory_space<vmem>>, %arg2: memref<1x64x16xf32, #tpu.memory_space<vmem>>, %arg3: memref<1x64x16xf32, #tpu.memory_space<vmem>>, %arg4: memref<1x17x16xf32, #tpu.memory_space<vmem>>, %arg5: memref<1x1x16xf32, #tpu.memory_space<vmem>>) attributes {dimension_semantics = [#tpu.dimension_semantics<parallel>], iteration_bounds = array<i64: 2>, scalar_prefetch = 0 : i64, scratch_operands = 0 : i64, tpu.core_type = #tpu.core_type<tc>, window_params = [{pipeline_mode = #tpu.pipeline_mode<synchronous>, transform_indices = @transform_0, window_bounds = array<i64: 17, 64>}, {transform_indices = @transform_1, window_bounds = array<i64: 1, 64, 16>}, {transform_indices = @transform_2, window_bounds = array<i64: 1, 64, 16>}, {transform_indices = @transform_3, window_bounds = array<i64: 1, 17, 16>}, {transform_indices = @transform_4, window_bounds = array<i64: 1, 1, 16>}]} {
    %c0 = arith.constant 0 : index
    %c0_0 = arith.constant 0 : index
    %0 = vector.load %arg1[%c0, %c0_0] : memref<17x64xf32, #tpu.memory_space<vmem>>, vector<17x64xf32>
    %c0_1 = arith.constant 0 : index
    %c0_2 = arith.constant 0 : index
    %c0_3 = arith.constant 0 : index
    %1 = vector.load %arg2[%c0_1, %c0_2, %c0_3] : memref<1x64x16xf32, #tpu.memory_space<vmem>>, vector<1x64x16xf32>
    %2 = vector.shape_cast %1 : vector<1x64x16xf32> to vector<64x16xf32>
    %c0_4 = arith.constant 0 : index
    %c0_5 = arith.constant 0 : index
    %c0_6 = arith.constant 0 : index
    %3 = vector.load %arg3[%c0_4, %c0_5, %c0_6] : memref<1x64x16xf32, #tpu.memory_space<vmem>>, vector<1x64x16xf32>
    %4 = vector.shape_cast %3 : vector<1x64x16xf32> to vector<64x16xf32>
    %cst = arith.constant dense<0.000000e+00> : vector<17x16xf32>
    %5 = tpu.matmul %0, %2, %cst {dimension_numbers = #tpu.dot_dimension_numbers<[1], [0], [0], [1], [0, 0, 1, 1], [], []>} : vector<17x64xf32>, vector<64x16xf32>, vector<17x16xf32> -> vector<17x16xf32>
    %cst_7 = arith.constant dense<0.000000e+00> : vector<17x16xf32>
    %6 = tpu.matmul %0, %4, %cst_7 {dimension_numbers = #tpu.dot_dimension_numbers<[1], [0], [0], [1], [0, 0, 1, 1], [], []>} : vector<17x64xf32>, vector<64x16xf32>, vector<17x16xf32> -> vector<17x16xf32>
    %7 = tpu.iota {dimensions = array<i32: 1>} : vector<1x16xi32>
    %c4_i32 = arith.constant 4 : i32
    %c0_i32 = arith.constant 0 : i32
    %8 = arith.cmpi eq, %c4_i32, %c0_i32 : i32
    %c1_i32 = arith.constant 1 : i32
    %9 = arith.select %8, %c1_i32, %c4_i32 : i32
    %10 = vector.broadcast %9 : i32 to vector<1x16xi32>
    %11 = arith.remsi %7, %10 : vector<1x16xi32>
    %c0_i32_8 = arith.constant 0 : i32
    %12 = vector.broadcast %c0_i32_8 : i32 to vector<1x16xi32>
    %13 = arith.cmpi ne, %11, %12 : vector<1x16xi32>
    %c0_i32_9 = arith.constant 0 : i32
    %14 = vector.broadcast %c0_i32_9 : i32 to vector<1x16xi32>
    %15 = arith.cmpi slt, %11, %14 : vector<1x16xi32>
    %c0_i32_10 = arith.constant 0 : i32
    %16 = arith.cmpi slt, %9, %c0_i32_10 : i32
    %17 = vector.broadcast %16 : i1 to vector<1x16xi1>
    %18 = vector.broadcast %17 : vector<1x16xi1> to vector<1x16xi1>
    %19 = arith.xori %15, %18 : vector<1x16xi1>
    %20 = arith.andi %19, %13 : vector<1x16xi1>
    %21 = vector.broadcast %9 : i32 to vector<1x16xi32>
    %22 = arith.addi %11, %21 : vector<1x16xi32>
    %23 = arith.select %20, %22, %11 : vector<1x16xi1>, vector<1x16xi32>
    %c0_i32_11 = arith.constant 0 : i32
    %24 = vector.broadcast %c0_i32_11 : i32 to vector<1x16xi32>
    %25 = arith.cmpi ne, %23, %24 : vector<1x16xi32>
    %c3_i32 = arith.constant 3 : i32
    %26 = vector.broadcast %c3_i32 : i32 to vector<1x16xi32>
    %27 = arith.cmpi ne, %23, %26 : vector<1x16xi32>
    %cst_12 = arith.constant 0.384397328 : f32
    %28 = vector.broadcast %cst_12 : f32 to vector<17x16xf32>
    %29 = arith.mulf %28, %5 : vector<17x16xf32>
    %cst_13 = arith.constant 0.000000e+00 : f32
    %30 = vector.broadcast %cst_13 : f32 to vector<17x1xf32>
    %31 = vector.extract_strided_slice %5 {offsets = [0, 0], sizes = [17, 15], strides = [1, 1]} : vector<17x16xf32> to vector<17x15xf32>
    %32 = tpu.concatenate %30, %31 in 1 : vector<17x1xf32>, vector<17x15xf32> -> vector<17x16xf32>
    %cst_14 = arith.constant 0.000000e+00 : f32
    %33 = vector.shape_cast %25 : vector<1x16xi1> to vector<1x16xi1>
    %34 = vector.broadcast %33 : vector<1x16xi1> to vector<17x16xi1>
    %35 = vector.broadcast %cst_14 : f32 to vector<17x16xf32>
    %36 = arith.select %34, %32, %35 : vector<17x16xi1>, vector<17x16xf32>
    %cst_15 = arith.constant 0.307801336 : f32
    %37 = vector.broadcast %cst_15 : f32 to vector<17x16xf32>
    %38 = arith.mulf %37, %36 : vector<17x16xf32>
    %39 = arith.addf %29, %38 : vector<17x16xf32>
    %40 = vector.extract_strided_slice %5 {offsets = [0, 1], sizes = [17, 15], strides = [1, 1]} : vector<17x16xf32> to vector<17x15xf32>
    %cst_16 = arith.constant 0.000000e+00 : f32
    %41 = vector.broadcast %cst_16 : f32 to vector<17x1xf32>
    %42 = tpu.concatenate %40, %41 in 1 : vector<17x15xf32>, vector<17x1xf32> -> vector<17x16xf32>
    %cst_17 = arith.constant 0.000000e+00 : f32
    %43 = vector.shape_cast %27 : vector<1x16xi1> to vector<1x16xi1>
    %44 = vector.broadcast %43 : vector<1x16xi1> to vector<17x16xi1>
    %45 = vector.broadcast %cst_17 : f32 to vector<17x16xf32>
    %46 = arith.select %44, %42, %45 : vector<17x16xi1>, vector<17x16xf32>
    %cst_18 = arith.constant 0.307801336 : f32
    %47 = vector.broadcast %cst_18 : f32 to vector<17x16xf32>
    %48 = arith.mulf %47, %46 : vector<17x16xf32>
    %49 = arith.addf %39, %48 : vector<17x16xf32>
    %cst_19 = arith.constant 0.384397328 : f32
    %50 = vector.broadcast %cst_19 : f32 to vector<17x16xf32>
    %51 = arith.mulf %50, %49 : vector<17x16xf32>
    %cst_20 = arith.constant 0.000000e+00 : f32
    %52 = vector.broadcast %cst_20 : f32 to vector<17x4xf32>
    %53 = vector.extract_strided_slice %49 {offsets = [0, 0], sizes = [17, 12], strides = [1, 1]} : vector<17x16xf32> to vector<17x12xf32>
    %54 = tpu.concatenate %52, %53 in 1 : vector<17x4xf32>, vector<17x12xf32> -> vector<17x16xf32>
    %cst_21 = arith.constant 0.307801336 : f32
    %55 = vector.broadcast %cst_21 : f32 to vector<17x16xf32>
    %56 = arith.mulf %55, %54 : vector<17x16xf32>
    %57 = arith.addf %51, %56 : vector<17x16xf32>
    %58 = vector.extract_strided_slice %49 {offsets = [0, 4], sizes = [17, 12], strides = [1, 1]} : vector<17x16xf32> to vector<17x12xf32>
    %cst_22 = arith.constant 0.000000e+00 : f32
    %59 = vector.broadcast %cst_22 : f32 to vector<17x4xf32>
    %60 = tpu.concatenate %58, %59 in 1 : vector<17x12xf32>, vector<17x4xf32> -> vector<17x16xf32>
    %cst_23 = arith.constant 0.307801336 : f32
    %61 = vector.broadcast %cst_23 : f32 to vector<17x16xf32>
    %62 = arith.mulf %61, %60 : vector<17x16xf32>
    %63 = arith.addf %57, %62 : vector<17x16xf32>
    %cst_24 = arith.constant 0.384397328 : f32
    %64 = vector.broadcast %cst_24 : f32 to vector<17x16xf32>
    %65 = arith.mulf %64, %6 : vector<17x16xf32>
    %cst_25 = arith.constant 0.000000e+00 : f32
    %66 = vector.broadcast %cst_25 : f32 to vector<17x1xf32>
    %67 = vector.extract_strided_slice %6 {offsets = [0, 0], sizes = [17, 15], strides = [1, 1]} : vector<17x16xf32> to vector<17x15xf32>
    %68 = tpu.concatenate %66, %67 in 1 : vector<17x1xf32>, vector<17x15xf32> -> vector<17x16xf32>
    %cst_26 = arith.constant 0.000000e+00 : f32
    %69 = vector.shape_cast %25 : vector<1x16xi1> to vector<1x16xi1>
    %70 = vector.broadcast %69 : vector<1x16xi1> to vector<17x16xi1>
    %71 = vector.broadcast %cst_26 : f32 to vector<17x16xf32>
    %72 = arith.select %70, %68, %71 : vector<17x16xi1>, vector<17x16xf32>
    %cst_27 = arith.constant 0.307801336 : f32
    %73 = vector.broadcast %cst_27 : f32 to vector<17x16xf32>
    %74 = arith.mulf %73, %72 : vector<17x16xf32>
    %75 = arith.addf %65, %74 : vector<17x16xf32>
    %76 = vector.extract_strided_slice %6 {offsets = [0, 1], sizes = [17, 15], strides = [1, 1]} : vector<17x16xf32> to vector<17x15xf32>
    %cst_28 = arith.constant 0.000000e+00 : f32
    %77 = vector.broadcast %cst_28 : f32 to vector<17x1xf32>
    %78 = tpu.concatenate %76, %77 in 1 : vector<17x15xf32>, vector<17x1xf32> -> vector<17x16xf32>
    %cst_29 = arith.constant 0.000000e+00 : f32
    %79 = vector.shape_cast %27 : vector<1x16xi1> to vector<1x16xi1>
    %80 = vector.broadcast %79 : vector<1x16xi1> to vector<17x16xi1>
    %81 = vector.broadcast %cst_29 : f32 to vector<17x16xf32>
    %82 = arith.select %80, %78, %81 : vector<17x16xi1>, vector<17x16xf32>
    %cst_30 = arith.constant 0.307801336 : f32
    %83 = vector.broadcast %cst_30 : f32 to vector<17x16xf32>
    %84 = arith.mulf %83, %82 : vector<17x16xf32>
    %85 = arith.addf %75, %84 : vector<17x16xf32>
    %cst_31 = arith.constant 0.384397328 : f32
    %86 = vector.broadcast %cst_31 : f32 to vector<17x16xf32>
    %87 = arith.mulf %86, %85 : vector<17x16xf32>
    %cst_32 = arith.constant 0.000000e+00 : f32
    %88 = vector.broadcast %cst_32 : f32 to vector<17x4xf32>
    %89 = vector.extract_strided_slice %85 {offsets = [0, 0], sizes = [17, 12], strides = [1, 1]} : vector<17x16xf32> to vector<17x12xf32>
    %90 = tpu.concatenate %88, %89 in 1 : vector<17x4xf32>, vector<17x12xf32> -> vector<17x16xf32>
    %cst_33 = arith.constant 0.307801336 : f32
    %91 = vector.broadcast %cst_33 : f32 to vector<17x16xf32>
    %92 = arith.mulf %91, %90 : vector<17x16xf32>
    %93 = arith.addf %87, %92 : vector<17x16xf32>
    %94 = vector.extract_strided_slice %85 {offsets = [0, 4], sizes = [17, 12], strides = [1, 1]} : vector<17x16xf32> to vector<17x12xf32>
    %cst_34 = arith.constant 0.000000e+00 : f32
    %95 = vector.broadcast %cst_34 : f32 to vector<17x4xf32>
    %96 = tpu.concatenate %94, %95 in 1 : vector<17x12xf32>, vector<17x4xf32> -> vector<17x16xf32>
    %cst_35 = arith.constant 0.307801336 : f32
    %97 = vector.broadcast %cst_35 : f32 to vector<17x16xf32>
    %98 = arith.mulf %97, %96 : vector<17x16xf32>
    %99 = arith.addf %93, %98 : vector<17x16xf32>
    %100 = arith.mulf %5, %5 : vector<17x16xf32>
    %cst_36 = arith.constant 0.384397328 : f32
    %101 = vector.broadcast %cst_36 : f32 to vector<17x16xf32>
    %102 = arith.mulf %101, %100 : vector<17x16xf32>
    %cst_37 = arith.constant 0.000000e+00 : f32
    %103 = vector.broadcast %cst_37 : f32 to vector<17x1xf32>
    %104 = vector.extract_strided_slice %100 {offsets = [0, 0], sizes = [17, 15], strides = [1, 1]} : vector<17x16xf32> to vector<17x15xf32>
    %105 = tpu.concatenate %103, %104 in 1 : vector<17x1xf32>, vector<17x15xf32> -> vector<17x16xf32>
    %cst_38 = arith.constant 0.000000e+00 : f32
    %106 = vector.shape_cast %25 : vector<1x16xi1> to vector<1x16xi1>
    %107 = vector.broadcast %106 : vector<1x16xi1> to vector<17x16xi1>
    %108 = vector.broadcast %cst_38 : f32 to vector<17x16xf32>
    %109 = arith.select %107, %105, %108 : vector<17x16xi1>, vector<17x16xf32>
    %cst_39 = arith.constant 0.307801336 : f32
    %110 = vector.broadcast %cst_39 : f32 to vector<17x16xf32>
    %111 = arith.mulf %110, %109 : vector<17x16xf32>
    %112 = arith.addf %102, %111 : vector<17x16xf32>
    %113 = vector.extract_strided_slice %100 {offsets = [0, 1], sizes = [17, 15], strides = [1, 1]} : vector<17x16xf32> to vector<17x15xf32>
    %cst_40 = arith.constant 0.000000e+00 : f32
    %114 = vector.broadcast %cst_40 : f32 to vector<17x1xf32>
    %115 = tpu.concatenate %113, %114 in 1 : vector<17x15xf32>, vector<17x1xf32> -> vector<17x16xf32>
    %cst_41 = arith.constant 0.000000e+00 : f32
    %116 = vector.shape_cast %27 : vector<1x16xi1> to vector<1x16xi1>
    %117 = vector.broadcast %116 : vector<1x16xi1> to vector<17x16xi1>
    %118 = vector.broadcast %cst_41 : f32 to vector<17x16xf32>
    %119 = arith.select %117, %115, %118 : vector<17x16xi1>, vector<17x16xf32>
    %cst_42 = arith.constant 0.307801336 : f32
    %120 = vector.broadcast %cst_42 : f32 to vector<17x16xf32>
    %121 = arith.mulf %120, %119 : vector<17x16xf32>
    %122 = arith.addf %112, %121 : vector<17x16xf32>
    %cst_43 = arith.constant 0.384397328 : f32
    %123 = vector.broadcast %cst_43 : f32 to vector<17x16xf32>
    %124 = arith.mulf %123, %122 : vector<17x16xf32>
    %cst_44 = arith.constant 0.000000e+00 : f32
    %125 = vector.broadcast %cst_44 : f32 to vector<17x4xf32>
    %126 = vector.extract_strided_slice %122 {offsets = [0, 0], sizes = [17, 12], strides = [1, 1]} : vector<17x16xf32> to vector<17x12xf32>
    %127 = tpu.concatenate %125, %126 in 1 : vector<17x4xf32>, vector<17x12xf32> -> vector<17x16xf32>
    %cst_45 = arith.constant 0.307801336 : f32
    %128 = vector.broadcast %cst_45 : f32 to vector<17x16xf32>
    %129 = arith.mulf %128, %127 : vector<17x16xf32>
    %130 = arith.addf %124, %129 : vector<17x16xf32>
    %131 = vector.extract_strided_slice %122 {offsets = [0, 4], sizes = [17, 12], strides = [1, 1]} : vector<17x16xf32> to vector<17x12xf32>
    %cst_46 = arith.constant 0.000000e+00 : f32
    %132 = vector.broadcast %cst_46 : f32 to vector<17x4xf32>
    %133 = tpu.concatenate %131, %132 in 1 : vector<17x12xf32>, vector<17x4xf32> -> vector<17x16xf32>
    %cst_47 = arith.constant 0.307801336 : f32
    %134 = vector.broadcast %cst_47 : f32 to vector<17x16xf32>
    %135 = arith.mulf %134, %133 : vector<17x16xf32>
    %136 = arith.addf %130, %135 : vector<17x16xf32>
    %137 = arith.mulf %63, %63 : vector<17x16xf32>
    %138 = arith.subf %136, %137 : vector<17x16xf32>
    %cst_48 = arith.constant 0.000000e+00 : f32
    %139 = vector.broadcast %cst_48 : f32 to vector<17x16xf32>
    %140 = arith.maximumf %138, %139 : vector<17x16xf32>
    %141 = arith.mulf %6, %6 : vector<17x16xf32>
    %cst_49 = arith.constant 0.384397328 : f32
    %142 = vector.broadcast %cst_49 : f32 to vector<17x16xf32>
    %143 = arith.mulf %142, %141 : vector<17x16xf32>
    %cst_50 = arith.constant 0.000000e+00 : f32
    %144 = vector.broadcast %cst_50 : f32 to vector<17x1xf32>
    %145 = vector.extract_strided_slice %141 {offsets = [0, 0], sizes = [17, 15], strides = [1, 1]} : vector<17x16xf32> to vector<17x15xf32>
    %146 = tpu.concatenate %144, %145 in 1 : vector<17x1xf32>, vector<17x15xf32> -> vector<17x16xf32>
    %cst_51 = arith.constant 0.000000e+00 : f32
    %147 = vector.shape_cast %25 : vector<1x16xi1> to vector<1x16xi1>
    %148 = vector.broadcast %147 : vector<1x16xi1> to vector<17x16xi1>
    %149 = vector.broadcast %cst_51 : f32 to vector<17x16xf32>
    %150 = arith.select %148, %146, %149 : vector<17x16xi1>, vector<17x16xf32>
    %cst_52 = arith.constant 0.307801336 : f32
    %151 = vector.broadcast %cst_52 : f32 to vector<17x16xf32>
    %152 = arith.mulf %151, %150 : vector<17x16xf32>
    %153 = arith.addf %143, %152 : vector<17x16xf32>
    %154 = vector.extract_strided_slice %141 {offsets = [0, 1], sizes = [17, 15], strides = [1, 1]} : vector<17x16xf32> to vector<17x15xf32>
    %cst_53 = arith.constant 0.000000e+00 : f32
    %155 = vector.broadcast %cst_53 : f32 to vector<17x1xf32>
    %156 = tpu.concatenate %154, %155 in 1 : vector<17x15xf32>, vector<17x1xf32> -> vector<17x16xf32>
    %cst_54 = arith.constant 0.000000e+00 : f32
    %157 = vector.shape_cast %27 : vector<1x16xi1> to vector<1x16xi1>
    %158 = vector.broadcast %157 : vector<1x16xi1> to vector<17x16xi1>
    %159 = vector.broadcast %cst_54 : f32 to vector<17x16xf32>
    %160 = arith.select %158, %156, %159 : vector<17x16xi1>, vector<17x16xf32>
    %cst_55 = arith.constant 0.307801336 : f32
    %161 = vector.broadcast %cst_55 : f32 to vector<17x16xf32>
    %162 = arith.mulf %161, %160 : vector<17x16xf32>
    %163 = arith.addf %153, %162 : vector<17x16xf32>
    %cst_56 = arith.constant 0.384397328 : f32
    %164 = vector.broadcast %cst_56 : f32 to vector<17x16xf32>
    %165 = arith.mulf %164, %163 : vector<17x16xf32>
    %cst_57 = arith.constant 0.000000e+00 : f32
    %166 = vector.broadcast %cst_57 : f32 to vector<17x4xf32>
    %167 = vector.extract_strided_slice %163 {offsets = [0, 0], sizes = [17, 12], strides = [1, 1]} : vector<17x16xf32> to vector<17x12xf32>
    %168 = tpu.concatenate %166, %167 in 1 : vector<17x4xf32>, vector<17x12xf32> -> vector<17x16xf32>
    %cst_58 = arith.constant 0.307801336 : f32
    %169 = vector.broadcast %cst_58 : f32 to vector<17x16xf32>
    %170 = arith.mulf %169, %168 : vector<17x16xf32>
    %171 = arith.addf %165, %170 : vector<17x16xf32>
    %172 = vector.extract_strided_slice %163 {offsets = [0, 4], sizes = [17, 12], strides = [1, 1]} : vector<17x16xf32> to vector<17x12xf32>
    %cst_59 = arith.constant 0.000000e+00 : f32
    %173 = vector.broadcast %cst_59 : f32 to vector<17x4xf32>
    %174 = tpu.concatenate %172, %173 in 1 : vector<17x12xf32>, vector<17x4xf32> -> vector<17x16xf32>
    %cst_60 = arith.constant 0.307801336 : f32
    %175 = vector.broadcast %cst_60 : f32 to vector<17x16xf32>
    %176 = arith.mulf %175, %174 : vector<17x16xf32>
    %177 = arith.addf %171, %176 : vector<17x16xf32>
    %178 = arith.mulf %99, %99 : vector<17x16xf32>
    %179 = arith.subf %177, %178 : vector<17x16xf32>
    %cst_61 = arith.constant 0.000000e+00 : f32
    %180 = vector.broadcast %cst_61 : f32 to vector<17x16xf32>
    %181 = arith.maximumf %179, %180 : vector<17x16xf32>
    %182 = tpu.iota {dimensions = array<i32: 0>} : vector<17x1xi32>
    %c0_i32_62 = arith.constant 0 : i32
    %183 = vector.broadcast %c0_i32_62 : i32 to vector<17x1xi32>
    %184 = arith.cmpi eq, %182, %183 : vector<17x1xi32>
    %cst_63 = arith.constant 1.000000e+03 : f32
    %cst_64 = arith.constant 3.000000e+02 : f32
    %185 = vector.broadcast %cst_63 : f32 to vector<17x1xf32>
    %186 = vector.broadcast %cst_64 : f32 to vector<17x1xf32>
    %187 = arith.select %184, %185, %186 : vector<17x1xi1>, vector<17x1xf32>
    %188 = arith.mulf %140, %181 : vector<17x16xf32>
    %189 = math.sqrt %188 : vector<17x16xf32>
    %cst_65 = arith.constant 2.000000e+00 : f32
    %190 = vector.broadcast %cst_65 : f32 to vector<17x16xf32>
    %191 = arith.mulf %190, %189 : vector<17x16xf32>
    %192 = vector.broadcast %187 : vector<17x1xf32> to vector<17x16xf32>
    %193 = arith.addf %191, %192 : vector<17x16xf32>
    %194 = arith.addf %140, %181 : vector<17x16xf32>
    %195 = vector.broadcast %187 : vector<17x1xf32> to vector<17x16xf32>
    %196 = arith.addf %194, %195 : vector<17x16xf32>
    %197 = tpu.reciprocal %196 {approx = true} : vector<17x16xf32> -> vector<17x16xf32>
    %198 = arith.mulf %193, %197 : vector<17x16xf32>
    %c0_66 = arith.constant 0 : index
    %c0_67 = arith.constant 0 : index
    %c0_68 = arith.constant 0 : index
    %199 = vector.load %arg4[%c0_66, %c0_67, %c0_68] : memref<1x17x16xf32, #tpu.memory_space<vmem>>, vector<1x17x16xf32>
    %200 = vector.shape_cast %199 : vector<1x17x16xf32> to vector<17x16xf32>
    %201 = vector.shape_cast %198 : vector<17x16xf32> to vector<1x17x16xf32>
    tpu.vector_store %arg4[%c0_66, %c0_67, %c0_68], %201 {strides = array<i32>} : memref<1x17x16xf32, #tpu.memory_space<vmem>>, vector<1x17x16xf32>,
    %202 = vector.extract_strided_slice %5 {offsets = [0, 0], sizes = [1, 16], strides = [1, 1]} : vector<17x16xf32> to vector<1x16xf32>
    %203 = vector.extract_strided_slice %6 {offsets = [0, 0], sizes = [1, 16], strides = [1, 1]} : vector<17x16xf32> to vector<1x16xf32>
    %204 = arith.mulf %202, %203 : vector<1x16xf32>
    %cst_69 = arith.constant 0.384397328 : f32
    %205 = vector.broadcast %cst_69 : f32 to vector<1x16xf32>
    %206 = arith.mulf %205, %204 : vector<1x16xf32>
    %cst_70 = arith.constant 0.000000e+00 : f32
    %207 = vector.broadcast %cst_70 : f32 to vector<1x1xf32>
    %208 = vector.extract_strided_slice %204 {offsets = [0, 0], sizes = [1, 15], strides = [1, 1]} : vector<1x16xf32> to vector<1x15xf32>
    %209 = tpu.concatenate %207, %208 in 1 : vector<1x1xf32>, vector<1x15xf32> -> vector<1x16xf32>
    %cst_71 = arith.constant 0.000000e+00 : f32
    %210 = vector.broadcast %cst_71 : f32 to vector<1x16xf32>
    %211 = arith.select %25, %209, %210 : vector<1x16xi1>, vector<1x16xf32>
    %cst_72 = arith.constant 0.307801336 : f32
    %212 = vector.broadcast %cst_72 : f32 to vector<1x16xf32>
    %213 = arith.mulf %212, %211 : vector<1x16xf32>
    %214 = arith.addf %206, %213 : vector<1x16xf32>
    %215 = vector.extract_strided_slice %204 {offsets = [0, 1], sizes = [1, 15], strides = [1, 1]} : vector<1x16xf32> to vector<1x15xf32>
    %cst_73 = arith.constant 0.000000e+00 : f32
    %216 = vector.broadcast %cst_73 : f32 to vector<1x1xf32>
    %217 = tpu.concatenate %215, %216 in 1 : vector<1x15xf32>, vector<1x1xf32> -> vector<1x16xf32>
    %cst_74 = arith.constant 0.000000e+00 : f32
    %218 = vector.broadcast %cst_74 : f32 to vector<1x16xf32>
    %219 = arith.select %27, %217, %218 : vector<1x16xi1>, vector<1x16xf32>
    %cst_75 = arith.constant 0.307801336 : f32
    %220 = vector.broadcast %cst_75 : f32 to vector<1x16xf32>
    %221 = arith.mulf %220, %219 : vector<1x16xf32>
    %222 = arith.addf %214, %221 : vector<1x16xf32>
    %cst_76 = arith.constant 0.384397328 : f32
    %223 = vector.broadcast %cst_76 : f32 to vector<1x16xf32>
    %224 = arith.mulf %223, %222 : vector<1x16xf32>
    %cst_77 = arith.constant 0.000000e+00 : f32
    %225 = vector.broadcast %cst_77 : f32 to vector<1x4xf32>
    %226 = vector.extract_strided_slice %222 {offsets = [0, 0], sizes = [1, 12], strides = [1, 1]} : vector<1x16xf32> to vector<1x12xf32>
    %227 = tpu.concatenate %225, %226 in 1 : vector<1x4xf32>, vector<1x12xf32> -> vector<1x16xf32>
    %cst_78 = arith.constant 0.307801336 : f32
    %228 = vector.broadcast %cst_78 : f32 to vector<1x16xf32>
    %229 = arith.mulf %228, %227 : vector<1x16xf32>
    %230 = arith.addf %224, %229 : vector<1x16xf32>
    %231 = vector.extract_strided_slice %222 {offsets = [0, 4], sizes = [1, 12], strides = [1, 1]} : vector<1x16xf32> to vector<1x12xf32>
    %cst_79 = arith.constant 0.000000e+00 : f32
    %232 = vector.broadcast %cst_79 : f32 to vector<1x4xf32>
    %233 = tpu.concatenate %231, %232 in 1 : vector<1x12xf32>, vector<1x4xf32> -> vector<1x16xf32>
    %cst_80 = arith.constant 0.307801336 : f32
    %234 = vector.broadcast %cst_80 : f32 to vector<1x16xf32>
    %235 = arith.mulf %234, %233 : vector<1x16xf32>
    %236 = arith.addf %230, %235 : vector<1x16xf32>
    %237 = vector.extract_strided_slice %63 {offsets = [0, 0], sizes = [1, 16], strides = [1, 1]} : vector<17x16xf32> to vector<1x16xf32>
    %238 = vector.extract_strided_slice %99 {offsets = [0, 0], sizes = [1, 16], strides = [1, 1]} : vector<17x16xf32> to vector<1x16xf32>
    %239 = arith.mulf %237, %238 : vector<1x16xf32>
    %240 = arith.subf %236, %239 : vector<1x16xf32>
    %cst_81 = arith.constant 1.000000e+03 : f32
    %241 = vector.broadcast %cst_81 : f32 to vector<1x16xf32>
    %242 = arith.addf %240, %241 : vector<1x16xf32>
    %243 = vector.extract_strided_slice %189 {offsets = [0, 0], sizes = [1, 16], strides = [1, 1]} : vector<17x16xf32> to vector<1x16xf32>
    %cst_82 = arith.constant 1.000000e+03 : f32
    %244 = vector.broadcast %cst_82 : f32 to vector<1x16xf32>
    %245 = arith.addf %243, %244 : vector<1x16xf32>
    %246 = tpu.reciprocal %245 {approx = true} : vector<1x16xf32> -> vector<1x16xf32>
    %247 = arith.mulf %242, %246 : vector<1x16xf32>
    %c0_83 = arith.constant 0 : index
    %c0_84 = arith.constant 0 : index
    %c0_85 = arith.constant 0 : index
    %248 = vector.load %arg5[%c0_83, %c0_84, %c0_85] : memref<1x1x16xf32, #tpu.memory_space<vmem>>, vector<1x1x16xf32>
    %249 = vector.shape_cast %248 : vector<1x1x16xf32> to vector<1x16xf32>
    %250 = vector.shape_cast %247 : vector<1x16xf32> to vector<1x1x16xf32>
    tpu.vector_store %arg5[%c0_83, %c0_84, %c0_85], %250 {strides = array<i32>} : memref<1x1x16xf32, #tpu.memory_space<vmem>>, vector<1x1x16xf32>,
    return
  }
  func.func @transform_0(%arg0: i32) -> (i32, i32) {
    %c0_i32 = arith.constant 0 : i32
    %c0_i32_0 = arith.constant 0 : i32
    %c0_i32_1 = arith.constant 0 : i32
    return %c0_i32, %c0_i32_0 : i32, i32
  }
  func.func @transform_1(%arg0: i32) -> (i32, i32, i32) {
    %c0_i32 = arith.constant 0 : i32
    %c0_i32_0 = arith.constant 0 : i32
    %c0_i32_1 = arith.constant 0 : i32
    return %arg0, %c0_i32, %c0_i32_0 : i32, i32, i32
  }
  func.func @transform_2(%arg0: i32) -> (i32, i32, i32) {
    %c0_i32 = arith.constant 0 : i32
    %c0_i32_0 = arith.constant 0 : i32
    %c0_i32_1 = arith.constant 0 : i32
    return %arg0, %c0_i32, %c0_i32_0 : i32, i32, i32
  }
  func.func @transform_3(%arg0: i32) -> (i32, i32, i32) {
    %c0_i32 = arith.constant 0 : i32
    %c0_i32_0 = arith.constant 0 : i32
    %c0_i32_1 = arith.constant 0 : i32
    return %arg0, %c0_i32, %c0_i32_0 : i32, i32, i32
  }
  func.func @transform_4(%arg0: i32) -> (i32, i32, i32) {
    %c0_i32 = arith.constant 0 : i32
    %c0_i32_0 = arith.constant 0 : i32
    %c0_i32_1 = arith.constant 0 : i32
    return %arg0, %c0_i32, %c0_i32_0 : i32, i32, i32
  }
}

</mosaic_0001>

<bundles_post_ra>
// kernel: neg.4
= control target key start
LH: loop header
LB: loop body
LE: loop exit
PB: predicated region body
PF: predicated region fallthrough
CT: control target
= control target key end

     0   :  { %s104_s0 = inlined_call_operand.vmem [shape: f32[2,17,16], index: 0, kind: input, shape index: {}]   ;;  %s105_s1 = inlined_call_operand.vmem [shape: f32[2,17,16], index: 1, kind: output, shape index: {}]  }
   0x1   :  { %v2_v0 = vld [vmem:[%s104_s0] sm:$0xff]  ;;  %v48_v1 = vld [vmem:[%s104_s0 + $0x18] sm:$0xff]  ;;  %v50_v2 = vld [vmem:[%s104_s0 + $0x8] sm:$0xff] }
   0x2   :  { %v5_v3 = vxor.u32 2147483648, %v2_v0  ;;  %v12_v4 = vxor.u32 2147483648, %v48_v1  ;;  %v20_v5 = vxor.u32 2147483648, %v50_v2  ;;  %v52_v6 = vld [vmem:[%s104_s0 + $0x20] sm:$0xff]  ;;  %v54_v7 = vld [vmem:[%s104_s0 + $0x10] sm:$0xff]  ;;  %v56_v8 = vld [vmem:[%s104_s0 + $0x28] sm:$0xff] }
   0x3   :  { %v28_v9 = vxor.u32 2147483648, %v52_v6  ;;  %v36_v10 = vxor.u32 2147483648, %v54_v7  ;;  %v44_v11 = vxor.u32 2147483648, %v56_v8 }
   0x4   :  { %7 = vst [vmem:[%s105_s1] sm:$0xff] %v5_v3  ;;  %49 = vst [vmem:[%s105_s1 + $0x18] sm:$0xff] %v12_v4 }
   0x5   :  { %51 = vst [vmem:[%s105_s1 + $0x8] sm:$0xff] %v20_v5  ;;  %53 = vst [vmem:[%s105_s1 + $0x20] sm:$0xff] %v28_v9 }
   0x6   :  { %55 = vst [vmem:[%s105_s1 + $0x10] sm:$0xff] %v36_v10  ;;  %57 = vst [vmem:[%s105_s1 + $0x28] sm:$0xff] %v44_v11 }

// kernel: neg.0
= control target key start
LH: loop header
LB: loop body
LE: loop exit
PB: predicated region body
PF: predicated region fallthrough
CT: control target
= control target key end

     0   :  { %s40_s0 = inlined_call_operand.vmem [shape: f32[2,1,16], index: 0, kind: input, shape index: {}]   ;;  %s41_s1 = inlined_call_operand.vmem [shape: f32[2,1,16], index: 1, kind: output, shape index: {}]  }
   0x1   :  { %v2_v0 = vld [vmem:[%s40_s0] sm:$0x1]  ;;  %v16_v1 = vld [vmem:[%s40_s0 + $0x1] sm:$0x1] }
   0x2   :  { %v5_v2 = vxor.u32 2147483648, %v2_v0  ;;  %v12_v3 = vxor.u32 2147483648, %v16_v1 }
   0x4   :  { %7 = vst [vmem:[%s41_s1] sm:$0x1] %v5_v2  ;;  %17 = vst [vmem:[%s41_s1 + $0x1] sm:$0x1] %v12_v3 }

// kernel: custom-call
= control target key start
LH: loop header
LB: loop body
LE: loop exit
PB: predicated region body
PF: predicated region fallthrough
CT: control target
= control target key end

     0   :  { %5 = vsyncpa [#allocation11], 0  ;;  %s1160_s0 = inlined_call_operand.vmem [shape: f32[2,16], index: 0, kind: input, shape index: {}]   ;;  %s1161_s1 = inlined_call_operand.vmem [shape: f32[2,1], index: 1, kind: output, shape index: {0}]   ;;  %s1162_s2 = inlined_call_operand.hbm [shape: s32[2,1], index: 2, kind: output, shape index: {1}]  }
   0x1   :  { %v28_v0 = vld [vmem:[%s1160_s0] sm:$0x3]  ;;  %v46_v1 = vlaneseq  ;;  %v1039_v23 = vmov 2147483648   ;;  %v1040_v24 = vmov 2147483647   ;;  %s1044_s6 = smov [#allocation10]  }
   0x2   :  { %29 = vst [vmem:[#allocation16] sm:$0x3] %v28_v0  ;;  %75 = vst [vmem:[#allocation13] sm:$0xff] %v1039_v23  ;;  %s967_s7 = sshll.u32 %s1044_s6, 4  ;;  %s968_s7 = int_to_ptr.vmem [resolvable:$true] %s967_s7 }
   0x3   :  { %v1064_v2 = vshrl.u32 %v46_v1, 7  ;;  %v47_v3 = vand.u32 127, %v46_v1  ;;  %76 = vst [vmem:[#allocation15] sm:$0xff] %v1040_v24  ;;  %s1015_s8 = scalar_lea.vmem %s968_s7, 32  ;;  %p1020_p3 = scmp.lt.s32.totalorder %s968_s7, %s968_s7 }
   0x4   :  { %p1016_p2 = scmp.ne.s32.totalorder %s968_s7, %s1015_s8  ;;  %p1021_p4 = scmp.lt.s32.totalorder %s1015_s8, %s1015_s8 }
   0x5   :  { %v50_v4 = vshrl.u32 %v1064_v2, 1 }
   0x6   :  { %p1022_p5 = por %p1021_p4, %p1020_p3 }
   0x7   :  { %v52_v5 = vmul.u32 128, %v50_v4 }
   0x8   :  { %p1023_p6 = pnand %p1022_p5, %p1016_p2 }
   0x9   :  { %v53_v6 = vadd.s32 %v52_v5, %v47_v3  ;;  %v55_v7 = vld [vmem:[#allocation16] sm:$0xff] }
   0xa   :  { %vm56_vm0 = vcmp.lt.s32.totalorder %v55_v7, 0  ;;  %v57_v8 = vsub.s32 2147483647, %v55_v7 }
   0xb   :  { %vm60_vm1 = vcmp.lt.s32.totalorder %v53_v6, 16  ;;  %v88_v9 = vrot.slane %v53_v6, 2 }
   0xc   :  { %v58_v10 = vsel %vm56_vm0, %v57_v8, %v55_v7 }
   0xd   :  { %v61_v11 = vsel %vm60_vm1, %v58_v10, 2147483648  ;;  %vm92_vm2 = vcmp.lt.s32.totalorder %v88_v9, %v53_v6 }
   0xe   :  { %62 = vst [vmem:[#allocation16] sm:$0xff] %v61_v11  ;;  %v87_v12 = vrot.slane %v61_v11, 2 }
  0x10   :  { %vm90_vm3 = vcmp.gt.s32.totalorder %v87_v12, %v61_v11  ;;  %vm91_vm4 = vcmp.eq.s32.totalorder %v87_v12, %v61_v11 }
  0x11   :  { %vm93_vm5 = vmand %vm91_vm4, %vm92_vm2 }
  0x12   :  { %vm94_vm6 = vmor %vm90_vm3, %vm93_vm5 }
  0x13   :  { %v95_v13 = vsel %vm94_vm6, %v87_v12, %v61_v11  ;;  %v96_v14 = vsel %vm94_vm6, %v88_v9, %v53_v6 }
  0x14   :  { %v98_v15 = vrot.slane %v95_v13, 2  ;;  %v99_v16 = vrot.slane %v96_v14, 2 }
  0x16   :  { %vm101_vm7 = vcmp.gt.s32.totalorder %v98_v15, %v95_v13  ;;  %vm102_vm8 = vcmp.eq.s32.totalorder %v98_v15, %v95_v13  ;;  %vm103_vm9 = vcmp.lt.s32.totalorder %v99_v16, %v96_v14 }
  0x17   :  { %vm104_vm10 = vmand %vm102_vm8, %vm103_vm9 }
  0x18   :  { %vm105_vm11 = vmor %vm101_vm7, %vm104_vm10 }
  0x19   :  { %v106_v17 = vsel %vm105_vm11, %v98_v15, %v95_v13  ;;  %v107_v18 = vsel %vm105_vm11, %v99_v16, %v96_v14 }
  0x1a   :  { %v109_v19 = vrot.slane %v106_v17, 2  ;;  %v110_v20 = vrot.slane %v107_v18, 2 }
  0x1c   :  { %vm112_vm12 = vcmp.gt.s32.totalorder %v109_v19, %v106_v17  ;;  %vm113_vm13 = vcmp.eq.s32.totalorder %v109_v19, %v106_v17  ;;  %vm114_vm14 = vcmp.lt.s32.totalorder %v110_v20, %v107_v18 }
  0x1d   :  { %vm115_vm15 = vmand %vm113_vm13, %vm114_vm14 }
  0x1e   :  { %vm116_vm0 = vmor %vm112_vm12, %vm115_vm15 }
  0x1f   :  { %v118_v21 = vsel %vm116_vm0, %v110_v20, %v107_v18  ;;  %v117_v22 = vsel %vm116_vm0, %v109_v19, %v106_v17 }
  0x20   :  { %152 = vxpose.xlu1.b32.start [1/16] %v118_v21, 128  ;;  %120 = vxpose.xlu0.b32.start [1/16] %v117_v22, 128 }
  0x24   :  { %153 = vxpose.xlu1.b32.cont [2/16] %v118_v21, 128  ;;  %121 = vxpose.xlu0.b32.cont [2/16] %v117_v22, 128 }
  0x28   :  { %154 = vxpose.xlu1.b32.cont [3/16] %v118_v21, 128  ;;  %122 = vxpose.xlu0.b32.cont [3/16] %v117_v22, 128 }
  0x2c   :  { %155 = vxpose.xlu1.b32.cont [4/16] %v118_v21, 128  ;;  %123 = vxpose.xlu0.b32.cont [4/16] %v117_v22, 128 }
  0x30   :  { %156 = vxpose.xlu1.b32.cont [5/16] %v118_v21, 128  ;;  %124 = vxpose.xlu0.b32.cont [5/16] %v117_v22, 128 }
  0x34   :  { %157 = vxpose.xlu1.b32.cont [6/16] %v118_v21, 128  ;;  %125 = vxpose.xlu0.b32.cont [6/16] %v117_v22, 128 }
  0x38   :  { %158 = vxpose.xlu1.b32.cont [7/16] %v118_v21, 128  ;;  %126 = vxpose.xlu0.b32.cont [7/16] %v117_v22, 128 }
  0x3c   :  { %159 = vxpose.xlu1.b32.cont [8/16] %v118_v21, 128  ;;  %127 = vxpose.xlu0.b32.cont [8/16] %v117_v22, 128 }
  0x40   :  { %160 = vxpose.xlu1.b32.cont [9/16] %v118_v21, 128  ;;  %128 = vxpose.xlu0.b32.cont [9/16] %v117_v22, 128 }
  0x44   :  { %161 = vxpose.xlu1.b32.cont [10/16] %v118_v21, 128  ;;  %129 = vxpose.xlu0.b32.cont [10/16] %v117_v22, 128 }
  0x48   :  { %162 = vxpose.xlu1.b32.cont [11/16] %v118_v21, 128  ;;  %130 = vxpose.xlu0.b32.cont [11/16] %v117_v22, 128 }
  0x4c   :  { %163 = vxpose.xlu1.b32.cont [12/16] %v118_v21, 128  ;;  %131 = vxpose.xlu0.b32.cont [12/16] %v117_v22, 128 }
  0x50   :  { %164 = vxpose.xlu1.b32.cont [13/16] %v118_v21, 128  ;;  %132 = vxpose.xlu0.b32.cont [13/16] %v117_v22, 128 }
  0x54   :  { %165 = vxpose.xlu1.b32.cont [14/16] %v118_v21, 128  ;;  %133 = vxpose.xlu0.b32.cont [14/16] %v117_v22, 128 }
  0x58   :  { %166 = vxpose.xlu1.b32.cont [15/16] %v118_v21, 128  ;;  %134 = vxpose.xlu0.b32.cont [15/16] %v117_v22, 128 }
  0x5c   :  { %167 = vxpose.xlu1.b32.end [16/16] %v118_v21, 128  ;;  %135 = vxpose.xlu0.b32.end [16/16] %v117_v22, 128 }
  0xa0   :  { %v168_v25 = vpop.trf.xlu1  ;;  %v136_v26 = vpop.trf.xlu0 }
  0xa4   :  { %v169_v27 = vpop.trf.xlu1  ;;  %v137_v28 = vpop.trf.xlu0 }
  0xa5   :  { %vm188_vm1 = vcmp.lt.s32.totalorder %v169_v27, %v168_v25  ;;  %vm186_vm2 = vcmp.gt.s32.totalorder %v137_v28, %v136_v26  ;;  %vm187_vm3 = vcmp.eq.s32.totalorder %v137_v28, %v136_v26 }
  0xa6   :  { %vm189_vm4 = vmand %vm187_vm3, %vm188_vm1 }
  0xa7   :  { %vm190_vm5 = vmor %vm186_vm2, %vm189_vm4 }
  0xa8   :  { %v191_v29 = vsel %vm190_vm5, %v137_v28, %v136_v26  ;;  %v170_v30 = vpop.trf.xlu1  ;;  %v192_v31 = vsel %vm190_vm5, %v169_v27, %v168_v25  ;;  %v138_v32 = vpop.trf.xlu0 }
  0xa9   :  { %vm197_vm6 = vcmp.lt.s32.totalorder %v170_v30, %v192_v31  ;;  %vm195_vm7 = vcmp.gt.s32.totalorder %v138_v32, %v191_v29  ;;  %vm196_vm8 = vcmp.eq.s32.totalorder %v138_v32, %v191_v29 }
  0xaa   :  { %vm198_vm9 = vmand %vm196_vm8, %vm197_vm6 }
  0xab   :  { %vm199_vm10 = vmor %vm195_vm7, %vm198_vm9 }
  0xac   :  { %v200_v33 = vsel %vm199_vm10, %v138_v32, %v191_v29  ;;  %v171_v34 = vpop.trf.xlu1  ;;  %v201_v35 = vsel %vm199_vm10, %v170_v30, %v192_v31  ;;  %v139_v36 = vpop.trf.xlu0 }
  0xad   :  { %vm206_vm11 = vcmp.lt.s32.totalorder %v171_v34, %v201_v35  ;;  %vm204_vm12 = vcmp.gt.s32.totalorder %v139_v36, %v200_v33  ;;  %vm205_vm13 = vcmp.eq.s32.totalorder %v139_v36, %v200_v33 }
  0xae   :  { %vm207_vm14 = vmand %vm205_vm13, %vm206_vm11 }
  0xaf   :  { %vm208_vm15 = vmor %vm204_vm12, %vm207_vm14 }
  0xb0   :  { %v209_v37 = vsel %vm208_vm15, %v139_v36, %v200_v33  ;;  %v172_v38 = vpop.trf.xlu1  ;;  %v210_v39 = vsel %vm208_vm15, %v171_v34, %v201_v35  ;;  %v140_v40 = vpop.trf.xlu0 }
  0xb1   :  { %vm215_vm0 = vcmp.lt.s32.totalorder %v172_v38, %v210_v39  ;;  %vm213_vm1 = vcmp.gt.s32.totalorder %v140_v40, %v209_v37  ;;  %vm214_vm2 = vcmp.eq.s32.totalorder %v140_v40, %v209_v37 }
  0xb2   :  { %vm216_vm3 = vmand %vm214_vm2, %vm215_vm0 }
  0xb3   :  { %vm217_vm4 = vmor %vm213_vm1, %vm216_vm3 }
  0xb4   :  { %v218_v41 = vsel %vm217_vm4, %v140_v40, %v209_v37  ;;  %v173_v42 = vpop.trf.xlu1  ;;  %v219_v43 = vsel %vm217_vm4, %v172_v38, %v210_v39  ;;  %v141_v44 = vpop.trf.xlu0 }
  0xb5   :  { %vm224_vm5 = vcmp.lt.s32.totalorder %v173_v42, %v219_v43  ;;  %vm222_vm6 = vcmp.gt.s32.totalorder %v141_v44, %v218_v41  ;;  %vm223_vm7 = vcmp.eq.s32.totalorder %v141_v44, %v218_v41 }
  0xb6   :  { %vm225_vm8 = vmand %vm223_vm7, %vm224_vm5 }
  0xb7   :  { %vm226_vm9 = vmor %vm222_vm6, %vm225_vm8 }
  0xb8   :  { %v227_v45 = vsel %vm226_vm9, %v141_v44, %v218_v41  ;;  %v174_v46 = vpop.trf.xlu1  ;;  %v228_v47 = vsel %vm226_vm9, %v173_v42, %v219_v43  ;;  %v142_v48 = vpop.trf.xlu0 }
  0xb9   :  { %vm233_vm10 = vcmp.lt.s32.totalorder %v174_v46, %v228_v47  ;;  %vm231_vm11 = vcmp.gt.s32.totalorder %v142_v48, %v227_v45  ;;  %vm232_vm12 = vcmp.eq.s32.totalorder %v142_v48, %v227_v45 }
  0xba   :  { %vm234_vm13 = vmand %vm232_vm12, %vm233_vm10 }
  0xbb   :  { %vm235_vm14 = vmor %vm231_vm11, %vm234_vm13 }
  0xbc   :  { %v236_v49 = vsel %vm235_vm14, %v142_v48, %v227_v45  ;;  %v175_v50 = vpop.trf.xlu1  ;;  %v237_v51 = vsel %vm235_vm14, %v174_v46, %v228_v47  ;;  %v143_v52 = vpop.trf.xlu0 }
  0xbd   :  { %vm242_vm15 = vcmp.lt.s32.totalorder %v175_v50, %v237_v51  ;;  %vm240_vm0 = vcmp.gt.s32.totalorder %v143_v52, %v236_v49  ;;  %vm241_vm1 = vcmp.eq.s32.totalorder %v143_v52, %v236_v49 }
  0xbe   :  { %vm243_vm2 = vmand %vm241_vm1, %vm242_vm15 }
  0xbf   :  { %vm244_vm3 = vmor %vm240_vm0, %vm243_vm2 }
  0xc0   :  { %v245_v53 = vsel %vm244_vm3, %v143_v52, %v236_v49  ;;  %v176_v54 = vpop.trf.xlu1  ;;  %v246_v55 = vsel %vm244_vm3, %v175_v50, %v237_v51  ;;  %v144_v56 = vpop.trf.xlu0 }
  0xc1   :  { %vm251_vm4 = vcmp.lt.s32.totalorder %v176_v54, %v246_v55  ;;  %vm249_vm5 = vcmp.gt.s32.totalorder %v144_v56, %v245_v53  ;;  %vm250_vm6 = vcmp.eq.s32.totalorder %v144_v56, %v245_v53 }
  0xc2   :  { %vm252_vm7 = vmand %vm250_vm6, %vm251_vm4 }
  0xc3   :  { %vm253_vm8 = vmor %vm249_vm5, %vm252_vm7 }
  0xc4   :  { %v254_v57 = vsel %vm253_vm8, %v144_v56, %v245_v53  ;;  %v177_v58 = vpop.trf.xlu1  ;;  %v255_v59 = vsel %vm253_vm8, %v176_v54, %v246_v55  ;;  %v145_v60 = vpop.trf.xlu0  ;;  %v1041_v54 = vmov 839939668  }
  0xc5   :  { %vm260_vm9 = vcmp.lt.s32.totalorder %v177_v58, %v255_v59  ;;  %vm258_vm10 = vcmp.gt.s32.totalorder %v145_v60, %v254_v57  ;;  %vm259_vm11 = vcmp.eq.s32.totalorder %v145_v60, %v254_v57  ;;  %v520_v55 = vunpack.c.l.s4 %v1041_v54 }
  0xc6   :  { %vm261_vm12 = vmand %vm259_vm11, %vm260_vm9 }
  0xc7   :  { %vm262_vm13 = vmor %vm258_vm10, %vm261_vm12  ;;  %v521_v56 = vunpack.c.0.s8 %v520_v55 }
  0xc8   :  { %v263_v61 = vsel %vm262_vm13, %v145_v60, %v254_v57  ;;  %v178_v62 = vpop.trf.xlu1  ;;  %v264_v63 = vsel %vm262_vm13, %v177_v58, %v255_v59  ;;  %v146_v0 = vpop.trf.xlu0  ;;  %v1042_v57 = vmov 1417023538  }
  0xc9   :  { %vm269_vm14 = vcmp.lt.s32.totalorder %v178_v62, %v264_v63  ;;  %vm267_vm15 = vcmp.gt.s32.totalorder %v146_v0, %v263_v61  ;;  %vm268_vm0 = vcmp.eq.s32.totalorder %v146_v0, %v263_v61  ;;  %v548_v58 = vunpack.c.l.s4 %v1042_v57 }
  0xca   :  { %vm270_vm1 = vmand %vm268_vm0, %vm269_vm14 }
  0xcb   :  { %vm271_vm2 = vmor %vm267_vm15, %vm270_vm1 }
  0xcc   :  { %v272_v3 = vsel %vm271_vm2, %v146_v0, %v263_v61  ;;  %v179_v4 = vpop.trf.xlu1  ;;  %v273_v5 = vsel %vm271_vm2, %v178_v62, %v264_v63  ;;  %v147_v6 = vpop.trf.xlu0  ;;  %v1070_v61 = vsub.s32 %v521_v56, %v1064_v2  ;;  %v541_v62 = vand.u32 4, %v1064_v2 }
  0xcd   :  { %vm278_vm3 = vcmp.lt.s32.totalorder %v179_v4, %v273_v5  ;;  %vm276_vm4 = vcmp.gt.s32.totalorder %v147_v6, %v272_v3  ;;  %vm277_vm5 = vcmp.eq.s32.totalorder %v147_v6, %v272_v3  ;;  %v549_v63 = vunpack.c.0.s8 %v548_v58 }
  0xce   :  { %vm279_vm6 = vmand %vm277_vm5, %vm278_vm3 }
  0xcf   :  { %vm280_vm7 = vmor %vm276_vm4, %vm279_vm6 }
  0xd0   :  { %v281_v7 = vsel %vm280_vm7, %v147_v6, %v272_v3  ;;  %v180_v8 = vpop.trf.xlu1  ;;  %v282_v9 = vsel %vm280_vm7, %v179_v4, %v273_v5  ;;  %v148_v10 = vpop.trf.xlu0 }
  0xd1   :  { %vm287_vm8 = vcmp.lt.s32.totalorder %v180_v8, %v282_v9  ;;  %vm285_vm9 = vcmp.gt.s32.totalorder %v148_v10, %v281_v7  ;;  %vm286_vm10 = vcmp.eq.s32.totalorder %v148_v10, %v281_v7 }
  0xd2   :  { %vm288_vm11 = vmand %vm286_vm10, %vm287_vm8 }
  0xd3   :  { %vm289_vm12 = vmor %vm285_vm9, %vm288_vm11 }
  0xd4   :  { %v290_v11 = vsel %vm289_vm12, %v148_v10, %v281_v7  ;;  %v181_v12 = vpop.trf.xlu1  ;;  %v291_v13 = vsel %vm289_vm12, %v180_v8, %v282_v9  ;;  %v149_v14 = vpop.trf.xlu0 }
  0xd5   :  { %vm296_vm13 = vcmp.lt.s32.totalorder %v181_v12, %v291_v13  ;;  %vm294_vm14 = vcmp.gt.s32.totalorder %v149_v14, %v290_v11  ;;  %vm295_vm15 = vcmp.eq.s32.totalorder %v149_v14, %v290_v11 }
  0xd6   :  { %vm297_vm0 = vmand %vm295_vm15, %vm296_vm13 }
  0xd7   :  { %vm298_vm1 = vmor %vm294_vm14, %vm297_vm0 }
  0xd8   :  { %v299_v15 = vsel %vm298_vm1, %v149_v14, %v290_v11  ;;  %v182_v16 = vpop.trf.xlu1  ;;  %v300_v17 = vsel %vm298_vm1, %v181_v12, %v291_v13  ;;  %v150_v18 = vpop.trf.xlu0  ;;  %v1043_v11 = vmov 1732584193   ;;  %v1082_v13 = vsub.s32 %v549_v63, %v1064_v2 }
  0xd9   :  { %vm305_vm2 = vcmp.lt.s32.totalorder %v182_v16, %v300_v17  ;;  %vm303_vm3 = vcmp.gt.s32.totalorder %v150_v18, %v299_v15  ;;  %vm304_vm4 = vcmp.eq.s32.totalorder %v150_v18, %v299_v15  ;;  %v576_v12 = vunpack.c.l.s4 %v1043_v11 }
  0xda   :  { %vm306_vm5 = vmand %vm304_vm4, %vm305_vm2  ;;  %v569_v14 = vand.u32 2, %v1064_v2 }
  0xdb   :  { %vm307_vm6 = vmor %vm303_vm3, %vm306_vm5 }
  0xdc   :  { %v308_v19 = vsel %vm307_vm6, %v150_v18, %v299_v15  ;;  %v183_v20 = vpop.trf.xlu1  ;;  %v309_v21 = vsel %vm307_vm6, %v182_v16, %v300_v17  ;;  %v151_v22 = vpop.trf.xlu0  ;;  %v577_v15 = vunpack.c.0.s8 %v576_v12 }
  0xdd   :  { %vm314_vm7 = vcmp.lt.s32.totalorder %v183_v20, %v309_v21  ;;  %vm312_vm8 = vcmp.gt.s32.totalorder %v151_v22, %v308_v19  ;;  %vm313_vm9 = vcmp.eq.s32.totalorder %v151_v22, %v308_v19 }
  0xde   :  { %vm315_vm10 = vmand %vm313_vm9, %vm314_vm7 }
  0xdf   :  { %vm316_vm11 = vmor %vm312_vm8, %vm315_vm10 }
  0xe0   :  { %v317_v24 = vsel %vm316_vm11, %v151_v22, %v308_v19  ;;  %v318_v25 = vsel %vm316_vm11, %v183_v20, %v309_v21  ;;  %v1096_v22 = vsub.s32 %v577_v15, %v1064_v2 }
  0xe1   :  { %v320_v26 = vrot.slane %v317_v24, 1  ;;  %v321_v27 = vrot.slane %v318_v25, 1 }
  0xe3   :  { %vm323_vm12 = vcmp.gt.s32.totalorder %v320_v26, %v317_v24  ;;  %vm324_vm13 = vcmp.eq.s32.totalorder %v320_v26, %v317_v24  ;;  %vm325_vm14 = vcmp.lt.s32.totalorder %v321_v27, %v318_v25 }
  0xe4   :  { %vm326_vm15 = vmand %vm324_vm13, %vm325_vm14 }
  0xe5   :  { %vm327_vm0 = vmor %vm323_vm12, %vm326_vm15 }
  0xe6   :  { %v328_v28 = vsel %vm327_vm0, %v320_v26, %v317_v24  ;;  %v329_v29 = vsel %vm327_vm0, %v321_v27, %v318_v25  ;;  %v597_v27 = vand.u32 1, %v1064_v2 }
  0xe7   :  { %v331_v30 = vrot.slane %v328_v28, 1  ;;  %v332_v31 = vrot.slane %v329_v29, 1 }
  0xe9   :  { %vm334_vm1 = vcmp.gt.s32.totalorder %v331_v30, %v328_v28  ;;  %vm335_vm2 = vcmp.eq.s32.totalorder %v331_v30, %v328_v28  ;;  %vm336_vm3 = vcmp.lt.s32.totalorder %v332_v31, %v329_v29 }
  0xea   :  { %vm337_vm4 = vmand %vm335_vm2, %vm336_vm3 }
  0xeb   :  { %vm338_vm5 = vmor %vm334_vm1, %vm337_vm4 }
  0xec   :  { %v339_v32 = vsel %vm338_vm5, %v331_v30, %v328_v28  ;;  %v340_v33 = vsel %vm338_vm5, %v332_v31, %v329_v29 }
  0xed   :  { %v342_v34 = vrot.slane %v339_v32, 1  ;;  %v343_v35 = vrot.slane %v340_v33, 1 }
  0xef   :  { %vm347_vm6 = vcmp.lt.s32.totalorder %v343_v35, %v340_v33  ;;  %vm345_vm7 = vcmp.gt.s32.totalorder %v342_v34, %v339_v32  ;;  %vm346_vm8 = vcmp.eq.s32.totalorder %v342_v34, %v339_v32 }
  0xf0   :  { %vm348_vm9 = vmand %vm346_vm8, %vm347_vm6 }
  0xf1   :  { %vm349_vm10 = vmor %vm345_vm7, %vm348_vm9 }
  0xf2   :  { %v350_v36 = vsel %vm349_vm10, %v342_v34, %v339_v32  ;;  %v351_v37 = vsel %vm349_vm10, %v343_v35, %v340_v33 }
  0xf3   :  { %v353_v38 = vrot.slane %v350_v36, 1  ;;  %v354_v39 = vrot.slane %v351_v37, 1 }
  0xf5   :  { %vm356_vm11 = vcmp.gt.s32.totalorder %v353_v38, %v350_v36  ;;  %vm357_vm12 = vcmp.eq.s32.totalorder %v353_v38, %v350_v36  ;;  %vm358_vm13 = vcmp.lt.s32.totalorder %v354_v39, %v351_v37 }
  0xf6   :  { %vm359_vm14 = vmand %vm357_vm12, %vm358_vm13 }
  0xf7   :  { %vm360_vm15 = vmor %vm356_vm11, %vm359_vm14 }
  0xf8   :  { %v361_v40 = vsel %vm360_vm15, %v353_v38, %v350_v36  ;;  %v362_v41 = vsel %vm360_vm15, %v354_v39, %v351_v37 }
  0xf9   :  { %v364_v42 = vrot.slane %v361_v40, 1  ;;  %v365_v43 = vrot.slane %v362_v41, 1 }
  0xfb   :  { %vm367_vm0 = vcmp.gt.s32.totalorder %v364_v42, %v361_v40  ;;  %vm368_vm1 = vcmp.eq.s32.totalorder %v364_v42, %v361_v40  ;;  %vm369_vm2 = vcmp.lt.s32.totalorder %v365_v43, %v362_v41 }
  0xfc   :  { %vm370_vm3 = vmand %vm368_vm1, %vm369_vm2 }
  0xfd   :  { %vm371_vm4 = vmor %vm367_vm0, %vm370_vm3 }
  0xfe   :  { %v372_v44 = vsel %vm371_vm4, %v364_v42, %v361_v40  ;;  %v373_v45 = vsel %vm371_vm4, %v365_v43, %v362_v41  ;;  %vm1077_vm4 = vcmp.ne.s32.totalorder %v541_v62, 0 }
  0xff   :  { %v375_v46 = vrot.slane %v372_v44, 1  ;;  %v376_v47 = vrot.slane %v373_v45, 1 }
 0x101   :  { %vm378_vm5 = vcmp.gt.s32.totalorder %v375_v46, %v372_v44  ;;  %vm379_vm6 = vcmp.eq.s32.totalorder %v375_v46, %v372_v44  ;;  %vm380_vm7 = vcmp.lt.s32.totalorder %v376_v47, %v373_v45 }
 0x102   :  { %vm381_vm8 = vmand %vm379_vm6, %vm380_vm7 }
 0x103   :  { %vm382_vm9 = vmor %vm378_vm5, %vm381_vm8 }
 0x104   :  { %v383_v48 = vsel %vm382_vm9, %v375_v46, %v372_v44  ;;  %v384_v49 = vsel %vm382_vm9, %v376_v47, %v373_v45 }
 0x105   :  { %v386_v50 = vrot.slane %v383_v48, 1  ;;  %v387_v51 = vrot.slane %v384_v49, 1 }
 0x107   :  { %vm389_vm10 = vcmp.gt.s32.totalorder %v386_v50, %v383_v48  ;;  %vm390_vm11 = vcmp.eq.s32.totalorder %v386_v50, %v383_v48  ;;  %vm391_vm12 = vcmp.lt.s32.totalorder %v387_v51, %v384_v49 }
 0x108   :  { %vm392_vm13 = vmand %vm390_vm11, %vm391_vm12 }
 0x109   :  { %vm393_vm14 = vmor %vm389_vm10, %vm392_vm13 }
 0x10a   :  { %v395_v52 = vsel %vm393_vm14, %v387_v51, %v384_v49  ;;  %v394_v53 = vsel %vm393_vm14, %v386_v50, %v383_v48 }
 0x10b   :  { %402 = vxpose.xlu0.b32.start.end [1/1] (short) (narrow) %v395_v52, 8  ;;  %398 = vst [vmem:[#allocation13] sm:$0x1] %v394_v53  ;;  %400 = vst [vmem:[#allocation15] sm:$0x1] %v395_v52 }
 0x112   :  { %v483_v59 = vld [vmem:[#allocation13 + $0x7] ss:$-1 sm:$0xff]  ;;  %v489_v60 = vld [vmem:[#allocation15 + $0x7] ss:$-1 sm:$0xff] }
 0x113   :  { %vm1001_vm15 = vcmp.lt.s32.totalorder %v483_v59, 2147483648  ;;  %vm1002_vm0 = vcmp.eq.s32.totalorder %v483_v59, 2147483648  ;;  %vm1003_vm1 = vcmp.gt.s32.totalorder %v489_v60, 2147483647 }
 0x114   :  { %vm504_vm2 = vmand %vm1002_vm0, %vm1003_vm1  ;;  %vm1089_vm0 = vcmp.ne.s32.totalorder %v569_v14, 0 }
 0x115   :  { %vm505_vm3 = vmor %vm1001_vm15, %vm504_vm2 }
 0x116   :  { %v506_v0 = vsel %vm505_vm3, 2147483648, %v483_v59  ;;  %v508_v3 = vsel %vm505_vm3, %v483_v59, 2147483648  ;;  %v510_v4 = vsel %vm505_vm3, 2147483647, %v489_v60  ;;  %v512_v5 = vsel %vm505_vm3, %v489_v60, 2147483647 }
 0x117   :  { %v525_v6 = vrot.slane %v506_v0, %v1070_v61  ;;  %v532_v7 = vrot.slane %v510_v4, %v1070_v61  ;;  %v706_v8 = vrot.slane %v508_v3, %v1070_v61  ;;  %v713_v9 = vrot.slane %v512_v5, %v1070_v61 }
 0x119   :  { %vm534_vm5 = vcmp.gt.s32.totalorder %v506_v0, %v525_v6  ;;  %vm535_vm6 = vcmp.eq.s32.totalorder %v506_v0, %v525_v6  ;;  %vm536_vm7 = vcmp.lt.s32.totalorder %v510_v4, %v532_v7  ;;  %vm716_vm9 = vcmp.eq.s32.totalorder %v508_v3, %v706_v8 }
 0x11a   :  { %vm537_vm8 = vmand %vm535_vm6, %vm536_vm7  ;;  %vm717_vm10 = vcmp.lt.s32.totalorder %v512_v5, %v713_v9  ;;  %vm715_vm12 = vcmp.gt.s32.totalorder %v508_v3, %v706_v8 }
 0x11b   :  { %vm538_vm11 = vmor %vm534_vm5, %vm537_vm8 }
 0x11c   :  { %vm543_vm13 = vmxor %vm538_vm11, %vm1077_vm4 }
 0x11d   :  { %v544_v16 = vsel %vm543_vm13, %v506_v0, %v525_v6  ;;  %v545_v17 = vsel %vm543_vm13, %v510_v4, %v532_v7  ;;  %vm718_vm14 = vmand %vm716_vm9, %vm717_vm10 }
 0x11e   :  { %v553_v18 = vrot.slane %v544_v16, %v1082_v13  ;;  %v560_v19 = vrot.slane %v545_v17, %v1082_v13  ;;  %vm719_vm15 = vmor %vm715_vm12, %vm718_vm14  ;;  %vm1105_vm14 = vcmp.ne.s32.totalorder %v597_v27, 0 }
 0x11f   :  { %vm724_vm1 = vmxor %vm719_vm15, %vm1077_vm4 }
 0x120   :  { %vm562_vm2 = vcmp.gt.s32.totalorder %v544_v16, %v553_v18  ;;  %vm563_vm3 = vcmp.eq.s32.totalorder %v544_v16, %v553_v18  ;;  %vm564_vm5 = vcmp.lt.s32.totalorder %v545_v17, %v560_v19  ;;  %v725_v21 = vsel %vm724_vm1, %v508_v3, %v706_v8 }
 0x121   :  { %vm565_vm6 = vmand %vm563_vm3, %vm564_vm5  ;;  %v726_v24 = vsel %vm724_vm1, %v512_v5, %v713_v9  ;;  %v734_v25 = vrot.slane %v725_v21, %v1082_v13 }
 0x122   :  { %vm566_vm7 = vmor %vm562_vm2, %vm565_vm6  ;;  %v741_v26 = vrot.slane %v726_v24, %v1082_v13 }
 0x123   :  { %vm571_vm8 = vmxor %vm566_vm7, %vm1089_vm0  ;;  %vm743_vm9 = vcmp.gt.s32.totalorder %v725_v21, %v734_v25  ;;  %vm744_vm10 = vcmp.eq.s32.totalorder %v725_v21, %v734_v25 }
 0x124   :  { %v572_v28 = vsel %vm571_vm8, %v544_v16, %v553_v18  ;;  %v573_v29 = vsel %vm571_vm8, %v545_v17, %v560_v19  ;;  %vm745_vm11 = vcmp.lt.s32.totalorder %v726_v24, %v741_v26 }
 0x125   :  { %v581_v30 = vrot.slane %v572_v28, %v1096_v22  ;;  %v588_v31 = vrot.slane %v573_v29, %v1096_v22  ;;  %vm746_vm12 = vmand %vm744_vm10, %vm745_vm11 }
 0x126   :  { %vm747_vm13 = vmor %vm743_vm9, %vm746_vm12 }
 0x127   :  { %vm590_vm15 = vcmp.gt.s32.totalorder %v572_v28, %v581_v30  ;;  %vm591_vm1 = vcmp.eq.s32.totalorder %v572_v28, %v581_v30  ;;  %vm592_vm2 = vcmp.lt.s32.totalorder %v573_v29, %v588_v31  ;;  %vm752_vm3 = vmxor %vm747_vm13, %vm1089_vm0 }
 0x128   :  { %vm593_vm5 = vmand %vm591_vm1, %vm592_vm2  ;;  %v753_v2 = vsel %vm752_vm3, %v725_v21, %v734_v25  ;;  %v754_v33 = vsel %vm752_vm3, %v726_v24, %v741_v26 }
 0x129   :  { %vm594_vm6 = vmor %vm590_vm15, %vm593_vm5  ;;  %v762_v34 = vrot.slane %v753_v2, %v1096_v22  ;;  %v769_v35 = vrot.slane %v754_v33, %v1096_v22 }
 0x12a   :  { %vm599_vm7 = vmxor %vm594_vm6, %vm1105_vm14 }
 0x12b   :  { %v600_v36 = vsel %vm599_vm7, %v572_v28, %v581_v30  ;;  %v601_v37 = vsel %vm599_vm7, %v573_v29, %v588_v31  ;;  %vm771_vm8 = vcmp.gt.s32.totalorder %v753_v2, %v762_v34  ;;  %vm772_vm9 = vcmp.eq.s32.totalorder %v753_v2, %v762_v34 }
 0x12c   :  { %v615_v38 = vrot.slane %v600_v36, %v1070_v61  ;;  %v622_v39 = vrot.slane %v601_v37, %v1070_v61  ;;  %vm773_vm10 = vcmp.lt.s32.totalorder %v754_v33, %v769_v35 }
 0x12d   :  { %vm774_vm11 = vmand %vm772_vm9, %vm773_vm10 }
 0x12e   :  { %vm624_vm12 = vcmp.gt.s32.totalorder %v600_v36, %v615_v38  ;;  %vm625_vm13 = vcmp.eq.s32.totalorder %v600_v36, %v615_v38  ;;  %vm626_vm15 = vcmp.lt.s32.totalorder %v601_v37, %v622_v39  ;;  %vm775_vm1 = vmor %vm771_vm8, %vm774_vm11 }
 0x12f   :  { %vm627_vm2 = vmand %vm625_vm13, %vm626_vm15 }
 0x130   :  { %vm628_vm3 = vmor %vm624_vm12, %vm627_vm2 }
 0x131   :  { %vm633_vm5 = vmxor %vm628_vm3, %vm1077_vm4 }
 0x132   :  { %v634_v40 = vsel %vm633_vm5, %v600_v36, %v615_v38  ;;  %v635_v41 = vsel %vm633_vm5, %v601_v37, %v622_v39  ;;  %vm780_vm6 = vmxor %vm775_vm1, %vm1105_vm14 }
 0x133   :  { %v643_v42 = vrot.slane %v634_v40, %v1082_v13  ;;  %v650_v43 = vrot.slane %v635_v41, %v1082_v13  ;;  %v781_v44 = vsel %vm780_vm6, %v753_v2, %v762_v34  ;;  %v782_v45 = vsel %vm780_vm6, %v754_v33, %v769_v35 }
 0x134   :  { %v796_v46 = vrot.slane %v781_v44, %v1070_v61  ;;  %v803_v47 = vrot.slane %v782_v45, %v1070_v61 }
 0x135   :  { %vm652_vm7 = vcmp.gt.s32.totalorder %v634_v40, %v643_v42  ;;  %vm653_vm8 = vcmp.eq.s32.totalorder %v634_v40, %v643_v42  ;;  %vm654_vm9 = vcmp.lt.s32.totalorder %v635_v41, %v650_v43 }
 0x136   :  { %vm655_vm10 = vmand %vm653_vm8, %vm654_vm9  ;;  %vm806_vm11 = vcmp.eq.s32.totalorder %v781_v44, %v796_v46  ;;  %vm807_vm12 = vcmp.lt.s32.totalorder %v782_v45, %v803_v47  ;;  %vm805_vm15 = vcmp.gt.s32.totalorder %v781_v44, %v796_v46 }
 0x137   :  { %vm656_vm13 = vmor %vm652_vm7, %vm655_vm10 }
 0x138   :  { %vm661_vm1 = vmxor %vm656_vm13, %vm1089_vm0 }
 0x139   :  { %v662_v48 = vsel %vm661_vm1, %v634_v40, %v643_v42  ;;  %v663_v49 = vsel %vm661_vm1, %v635_v41, %v650_v43  ;;  %vm808_vm2 = vmand %vm806_vm11, %vm807_vm12 }
 0x13a   :  { %v671_v50 = vrot.slane %v662_v48, %v1096_v22  ;;  %v678_v51 = vrot.slane %v663_v49, %v1096_v22  ;;  %vm809_vm3 = vmor %vm805_vm15, %vm808_vm2 }
 0x13b   :  { %vm814_vm5 = vmxor %vm809_vm3, %vm1077_vm4 }
 0x13c   :  { %vm680_vm6 = vcmp.gt.s32.totalorder %v662_v48, %v671_v50  ;;  %vm681_vm8 = vcmp.eq.s32.totalorder %v662_v48, %v671_v50  ;;  %vm682_vm9 = vcmp.lt.s32.totalorder %v663_v49, %v678_v51  ;;  %v815_v52 = vsel %vm814_vm5, %v781_v44, %v796_v46 }
 0x13d   :  { %vm683_vm7 = vmand %vm681_vm8, %vm682_vm9  ;;  %v816_v53 = vsel %vm814_vm5, %v782_v45, %v803_v47  ;;  %v824_v54 = vrot.slane %v815_v52, %v1082_v13 }
 0x13e   :  { %vm684_vm10 = vmor %vm680_vm6, %vm683_vm7  ;;  %v831_v55 = vrot.slane %v816_v53, %v1082_v13 }
 0x13f   :  { %vm689_vm11 = vmxor %vm684_vm10, %vm1105_vm14  ;;  %vm833_vm12 = vcmp.gt.s32.totalorder %v815_v52, %v824_v54  ;;  %vm834_vm13 = vcmp.eq.s32.totalorder %v815_v52, %v824_v54 }
 0x140   :  { %v690_v56 = vsel %vm689_vm11, %v662_v48, %v671_v50  ;;  %v691_v57 = vsel %vm689_vm11, %v663_v49, %v678_v51  ;;  %vm835_vm15 = vcmp.lt.s32.totalorder %v816_v53, %v831_v55 }
 0x141   :  { %vm836_vm4 = vmand %vm834_vm13, %vm835_vm15  ;;  %vm878_vm10 = vcmp.lt.s32.totalorder %v690_v56, 0  ;;  %v879_v7 = vsub.s32 2147483647, %v690_v56 }
 0x142   :  { %vm837_vm1 = vmor %vm833_vm12, %vm836_vm4 }
 0x143   :  { %vm842_vm2 = vmxor %vm837_vm1, %vm1089_vm0  ;;  %v880_v8 = vsel %vm878_vm10, %v879_v7, %v690_v56 }
 0x144   :  { %v843_v58 = vsel %vm842_vm2, %v815_v52, %v824_v54  ;;  %v844_v59 = vsel %vm842_vm2, %v816_v53, %v831_v55  ;;  %883 = vxpose.xlu0.b32.start.end [1/1] (short) (narrow) %v880_v8, 8 }
 0x145   :  { %v852_v60 = vrot.slane %v843_v58, %v1096_v22  ;;  %v859_v61 = vrot.slane %v844_v59, %v1096_v22 }
 0x147   :  { %vm861_vm3 = vcmp.gt.s32.totalorder %v843_v58, %v852_v60  ;;  %vm862_vm5 = vcmp.eq.s32.totalorder %v843_v58, %v852_v60  ;;  %vm863_vm6 = vcmp.lt.s32.totalorder %v844_v59, %v859_v61 }
 0x148   :  { %vm864_vm8 = vmand %vm862_vm5, %vm863_vm6  ;;  %902 = vxpose.xlu0.b32.start.end [1/1] (short) (narrow) %v691_v57, 8 }
 0x149   :  { %vm865_vm9 = vmor %vm861_vm3, %vm864_vm8 }
 0x14a   :  { %vm870_vm7 = vmxor %vm865_vm9, %vm1105_vm14 }
 0x14b   :  { %v871_v62 = vsel %vm870_vm7, %v843_v58, %v852_v60  ;;  %v872_v63 = vsel %vm870_vm7, %v844_v59, %v859_v61 }
 0x14c   :  { %874 = vst [vmem:[#allocation13] sm:$0xff] %v871_v62  ;;  %875 = vst [vmem:[#allocation15] sm:$0xff] %v872_v63 }
 0x18b   :  { %v418_v0 = vpop.trf.xlu0 }
 0x18c   :  { %v457_v3 = vrot.slane %v418_v0, 1  ;;  %1004 = vpush %v418_v0 }
 0x18e   :  { %1006 = vpush %v457_v3 }
 0x1bd   :  { %s1005_s0 = spop %1004 }
 0x1be   :  { %s435_s11 = sshrl.u32 %s1005_s0, 9  ;;  %s437_s12 = ssub.s32 0, %s1005_s0 }
 0x1bf   :  { %p436_p0 = scmp.lt.s32.totalorder %s1005_s0, 0  ;;  %s993_s13 = smin.u32 %s1005_s0, %s437_s12 }
 0x1c0   :  { %s439_s14 = sand.u32 511, %s993_s13   ;;  %s995_s15 = sshll.u32 %s435_s11, 3 }
 0x1c1   :  { %s440_s16 = ssub.s32 0, %s439_s14  ;;  %s1007_s17 = spop %1006 }
 0x1c2   :  { %s1170_s16 = smov (!%p436_p0, %s440_s16), %s439_s14  ;;  %s461_s21 = ssub.s32 0, %s1007_s17 }
 0x1c3   :  { %s442_s18 = sshrl.u32 %s1170_s16, 7  ;;  %s444_s19 = sand.u32 127, %s1170_s16  }
 0x1c4   :  { %s994_s20 = sshll.u32 %s442_s18, 8  ;;  %s997_s23 = smin.u32 %s1007_s17, %s461_s21  ;;  %v884_v9 = vpop.trf.xlu0 }
 0x1c5   :  { %s445_s22 = sadd.s32 %s994_s20, %s444_s19  ;;  %p460_p1 = scmp.lt.s32.totalorder %s1007_s17, 0  ;;  %900 = vst [vmem:[#allocation7] sm:$0xff] %v884_v9 }
 0x1c6   :  { %v447_v4 = vstv %s445_s22  ;;  %s463_s24 = sand.u32 511, %s997_s23   ;;  %s451_s26 = scalar_lea.vmem [#allocation16], %s995_s15 }
 0x1c7   :  { %vm449_vm0 = vcmp.eq.s32.totalorder %v46_v1, %v447_v4  ;;  %s464_s25 = ssub.s32 0, %s463_s24  ;;  %s459_s27 = sshrl.u32 %s1007_s17, 9 }
 0x1c8   :  { %452 = vst.msk [vmem:[%s451_s26] sm:$0xff] %vm449_vm0, %v1039_v23  ;;  %s1172_s25 = smov (!%p460_p1, %s464_s25), %s463_s24  ;;  %s999_s4 = sshll.u32 %s459_s27, 3  ;;  %v903_v10 = vpop.trf.xlu0 }
 0x1c9   :  { %s466_s28 = sshrl.u32 %s1172_s25, 7  ;;  %s468_s29 = sand.u32 127, %s1172_s25   ;;  %919 = vst [vmem:[#allocation9] sm:$0xff] %v903_v10 }
 0x1ca   :  { %s998_s30 = sshll.u32 %s466_s28, 8  ;;  %s475_s5 = scalar_lea.vmem [#allocation16], %s999_s4 }
 0x1cb   :  { %s469_s3 = sadd.s32 %s998_s30, %s468_s29 }
 0x1cc   :  { %v471_v5 = vstv %s469_s3  ;;  %v923_v11 = vld [vmem:[#allocation7] sm:$0x3] }
 0x1cd   :  { %v472_v6 = vadd.s32 128, %v471_v5  ;;  %925 = vst [vmem:[#allocation8] sm:$0x3] %v923_v11 }
 0x1cf   :  { %vm473_vm14 = vcmp.eq.s32.totalorder %v46_v1, %v472_v6 }
 0x1d0   :  { %476 = vst.msk [vmem:[%s475_s5] sm:$0xff] %vm473_vm14, %v1039_v23  ;;  %v929_v12 = vld [vmem:[#allocation9] sm:$0x3] }
 0x1d1   :  { %931 = vst [vmem:[#allocation10] sm:$0x3] %v929_v12 }
 0x1d2   :  { %1026 = shalt.err (!%p1023_p6)
}
 0x1d3   :  { %s1027_s0 = scalar_lea.hbm %s1162_s2, 32 }
 0x1d4   :  { %p1028_p7 = scmp.ne.s32.totalorder %s1162_s2, %s1027_s0  ;;  %p1031_p8 = scmp.lt.u32.totalorder %s1027_s0, %s1162_s2 }
 0x1d6   :  { %p1033_p9 = pnand %p1031_p8, %p1028_p7 }
 0x1d8   :  { %1036 = shalt.err (!%p1033_p9)
}
 0x1d9   :  { %970 = dma.vmem_to_hbm [thread:$0]  %s968_s7, 32, %s1162_s2, [#allocation11]   ;;  %v947_v1 = vld [vmem:[#allocation8] sm:$0x3] }
 0x1da   :  { %948 = vst [vmem:[%s1161_s1] sm:$0x3] %v947_v1 }
 0x1db   :  { %1037 = dma.done.wait [#allocation11], 32  }
 0x1dc   :  { %1038 = vsyncadd [#allocation11], 4294967264 }
 0x1dd   :  { %972 = vsyncpa [#allocation11], 1 }

// kernel: a_call__.1
= control target key start
LH: loop header
LB: loop body
LE: loop exit
PB: predicated region body
PF: predicated region fallthrough
CT: control target
= control target key end

     0   :  { %s1199_s15 = smov 0   ;;  %s1556_s0 = inlined_call_operand.vmem [shape: f32[17,64], index: 0, kind: input, shape index: {}]   ;;  %s1557_s1 = inlined_call_operand.vmem [shape: f32[2,64,16], index: 1, kind: input, shape index: {}]   ;;  %s1558_s2 = inlined_call_operand.vmem [shape: f32[2,64,16], index: 2, kind: input, shape index: {}]   ;;  %s1559_s3 = inlined_call_operand.vmem [shape: f32[2,17,16], index: 3, kind: output, shape index: {0}]   ;;  %s1560_s4 = inlined_call_operand.vmem [shape: f32[2,1,16], index: 4, kind: output, shape index: {1}]  }
   0x1 LB: > { %s1011_s16 = sadd.s32 4294967295, %s1164_s15   ;;  %p1015_p0 = scmp.ge.s32.totalorder %s1164_s15, 1  ;;  %s1164_s15 = sphi %s1199_s15, %s15_s15  }
   0x2   : > { %p175_p1 = scmp.lt.s32.totalorder %s1164_s15, 3 }
   0x4   : > { %p176_p2 = pnand %p1015_p0, %p175_p1 }
   0x5   : > { %p209_p3 = scmp.lt.s32.totalorder (!%p176_p2), %s1011_s16, 1  ;;  %v1166_v0 = vmov (!%p176_p2), 0.0|0.0   ;;  %vm1167_vm0 = vmmov (!%p176_p2), 0   ;;  %v1168_v1 = vmov (!%p176_p2), 0.0   ;;  %v227_v26 = vld [vmem:[%s1556_s0] sm:$0xff] (!%p176_p2)  ;;  %vm246_vm1 = vcmask (!%p176_p2), 523264  }
   0x6   : > { %179 = sbr.rel (%p176_p2) target bundleno = 568 (0x238), region = 32  ;;  %1103 = vmatprep.subr.bf16.mxu0 (!%p176_p2), %v1166_v0  ;;  %1115 = vmatprep.subr.bf16.mxu1 (!%p176_p2), %v1166_v0  ;;  %v228_v27 = vld [vmem:[%s1556_s0 + $0x8] sm:$0xff] (!%p176_p2)  ;;  %v229_v28 = vld [vmem:[%s1556_s0 + $0x10] sm:$0x1] (!%p176_p2)  ;;  %s1169_s30 = smov (!%p176_p2), 127   ;;  %v416_v48 = vlaneseq (!%p176_p2)  ;;  %vm471_vm2 = vcmask (!%p176_p2), 121856  }
   0x7   : > { %1069 = vmatprep.mubr.msk.f32.mxu0 (!%p176_p2), %vm1167_vm0, %v1168_v1  ;;  %1094 = vmatprep.mubr.msk.f32.mxu1 (!%p176_p2), %vm1167_vm0, %v1168_v1  ;;  %s1170_s5 = smov (!%p176_p2), 1   ;;  %vm447_vm3 = vcmask (!%p176_p2), 7168   ;;  %s1171_s6 = smov (!%p176_p2), 4   ;;  %vm501_vm6 = vcmask (!%p176_p2), 31744   ;;  %vm520_vm7 = vcmask (!%p176_p2), 97280   ;;  %vm876_vm11 = vcmask (!%p176_p2), 130048  }
   0x8   : > { %v417_v49 = vand.u32 (!%p176_p2), 127, %v416_v48  ;;  %s1172_s7 = smov (!%p176_p2), 124   ;;  %vm879_vm12 = vcmask (!%p176_p2), 122880  }
   0xa   : > { %v422_v50 = vand.u32 (!%p176_p2), 3, %v417_v49 }
   0xc   : > { %vm1317_vm4 = vcmp.ne.s32.totalorder (!%p176_p2), %v422_v50, 3  ;;  %vm1321_vm5 = vcmp.ne.s32.totalorder (!%p176_p2), %v422_v50, 0 }
   0xd   : > { %s1566_s16 = smov (!%p209_p3, %s1011_s16), 1 }
   0xe   : > { %s1029_s17 = sshll.u32 %s1566_s16, 6  ;;  %s1127_s8 = smul.u32 24, %s1566_s16 }
   0xf   : > { %s213_s20 = scalar_lea.vmem %s1557_s1, %s1029_s17  ;;  %s218_s23 = scalar_lea.vmem %s1558_s2, %s1029_s17 }
  0x10   : > { %v230_v2 = vld [vmem:[%s213_s20] sm:$0xff]  ;;  %v231_v3 = vld [vmem:[%s213_s20 + $0x8] sm:$0xff]  ;;  %v232_v7 = vld [vmem:[%s213_s20 + $0x10] sm:$0xff]  ;;  %s1530_s11 = scalar_lea.vmem %s1559_s3, %s1127_s8  ;;  %s226_s14 = scalar_lea.vmem %s1560_s4, %s1566_s16 }
  0x11   : > { %v238_v4 = vld [vmem:[%s218_s23] sm:$0xff]  ;;  %v1104_v5 = vpack.c.bf16 %v231_v3, %v230_v2  ;;  %v239_v6 = vld [vmem:[%s218_s23 + $0x8] sm:$0xff]  ;;  %v233_v8 = vld [vmem:[%s213_s20 + $0x18] sm:$0xff] }
  0x12   : > { %v1116_v9 = vpack.c.bf16 %v239_v6, %v238_v4  ;;  %v240_v10 = vld [vmem:[%s218_s23 + $0x10] sm:$0xff]  ;;  %v241_v11 = vld [vmem:[%s218_s23 + $0x18] sm:$0xff]  ;;  %v1107_v12 = vpack.c.bf16 %v233_v8, %v232_v7  ;;  %v234_v14 = vld [vmem:[%s213_s20 + $0x20] sm:$0xff] }
  0x13   : > { %1105 = vmatpush3.bf16.msra.mxu0 %v1104_v5  ;;  %v1119_v13 = vpack.c.bf16 %v241_v11, %v240_v10  ;;  %v235_v15 = vld [vmem:[%s213_s20 + $0x28] sm:$0xff]  ;;  %v242_v16 = vld [vmem:[%s218_s23 + $0x20] sm:$0xff]  ;;  %v236_v20 = vld [vmem:[%s213_s20 + $0x30] sm:$0xff] }
  0x14   : > { %1117 = vmatpush3.bf16.msra.mxu1 %v1116_v9  ;;  %1106 = vmatprep.subr.bf16.mxu0 %v1166_v0  ;;  %v243_v17 = vld [vmem:[%s218_s23 + $0x28] sm:$0xff]  ;;  %v1110_v18 = vpack.c.bf16 %v235_v15, %v234_v14  ;;  %v237_v21 = vld [vmem:[%s213_s20 + $0x38] sm:$0xff]  ;;  %v244_v22 = vld [vmem:[%s218_s23 + $0x30] sm:$0xff] }
  0x15   : > { %1118 = vmatprep.subr.bf16.mxu1 %v1166_v0  ;;  %v1122_v19 = vpack.c.bf16 %v243_v17, %v242_v16  ;;  %v245_v23 = vld [vmem:[%s218_s23 + $0x38] sm:$0xff]  ;;  %v1113_v24 = vpack.c.bf16 %v237_v21, %v236_v20 }
  0x16   : > { %v1125_v25 = vpack.c.bf16 %v245_v23, %v244_v22 }
  0x17   : > { %1108 = vmatpush3.bf16.msra.mxu0 %v1107_v12 }
  0x18   : > { %1120 = vmatpush3.bf16.msra.mxu1 %v1119_v13  ;;  %1109 = vmatprep.subr.bf16.mxu0 %v1166_v0 }
  0x19   : > { %1121 = vmatprep.subr.bf16.mxu1 %v1166_v0 }
  0x1b   : > { %1111 = vmatpush3.bf16.msra.mxu0 %v1110_v18 }
  0x1c   : > { %1123 = vmatpush3.bf16.msra.mxu1 %v1122_v19  ;;  %1112 = vmatprep.subr.bf16.mxu0 %v1166_v0 }
  0x1d   : > { %1124 = vmatprep.subr.bf16.mxu1 %v1166_v0 }
  0x1f   : > { %1114 = vmatpush3.bf16.msra.mxu0 %v1113_v24 }
  0x20   : > { %1126 = vmatpush3.bf16.msra.mxu1 %v1125_v25 }
  0x22   : > { %1070 = vmatmul.mubr.msk.f32.vlgmr.msra.gmra.mrb[0].mxu0 %vm246_vm1, %v227_v26 }
  0x23   : > { %1095 = vmatmul.mubr.msk.f32.vlgmr.msra.gmra.mrb[0].mxu1 %vm246_vm1, %v227_v26  ;;  %1072 = vmatprep.mubr.msk.f32.mxu0 %vm1167_vm0, %v1168_v1 }
  0x24   : > { %1097 = vmatprep.mubr.msk.f32.mxu1 %vm1167_vm0, %v1168_v1 }
  0x26   : > { %1073 = vmatmul.mubr.msk.f32.gmra.mrb[2].mxu0 %vm246_vm1, %v228_v27 }
  0x27   : > { %1075 = vmatprep.mubr.msk.f32.mxu0 %vm1167_vm0, %v1168_v1  ;;  %1098 = vmatmul.mubr.msk.f32.gmra.mrb[2].mxu1 %vm246_vm1, %v228_v27 }
  0x28   : > { %1100 = vmatprep.mubr.msk.f32.mxu1 %vm1167_vm0, %v1168_v1 }
  0x2a   : > { %1076 = vmatmul.mubr.msk.f32.gmra.mrb[4].mxu0 %vm246_vm1, %v229_v28 }
  0x2b   : > { %1101 = vmatmul.mubr.msk.f32.gmra.mrb[4].mxu1 %vm246_vm1, %v229_v28 }
  0xf5   : > { %v322_v29 = vpop.f32.mrb[0].mxu0 }
  0xf6   : > { %v1231_v30 = vpop.f32.mrb[0].mxu1  ;;  %462 = vrot.lane.b32.xlu1 %v322_v29, %s1169_s30  ;;  %438 = vrot.lane.b32.xlu0 %v322_v29, %s1170_s5  ;;  %v1071_v31 = vpop.f32.mrb[1].mxu0  ;;  %v1250_v39 = vmul.f32 %v322_v29, %v322_v29  ;;  %v432_v59 = vmul.f32 0.38439733, %v322_v29 }
  0xf7   : > { %v1096_v32 = vpop.f32.mrb[1].mxu1  ;;  %v1236_v33 = vmul.f32 %v1231_v30, %v322_v29  ;;  %v1248_v38 = vmul.f32 %v1231_v30, %v1231_v30  ;;  %v530_v5 = vmul.f32 0.38439733, %v1231_v30 }
  0xf8   : > { %v623_v21 = vmul.f32 0.38439733, %v1250_v39 }
  0xf9   : > { %v1238_v34 = vpop.f32.mrb[2].mxu0  ;;  %v725_v26 = vmul.f32 0.38439733, %v1248_v38 }
  0xfa   : > { %557 = vrot.lane.b32.xlu1 %v1231_v30, %s1169_s30  ;;  %536 = vrot.lane.b32.xlu0 %v1231_v30, %s1170_s5  ;;  %v1074_v35 = vpop.f32.mrb[3].mxu0  ;;  %v1244_v36 = vpop.f32.mrb[2].mxu1  ;;  %v1282_v44 = vmul.f32 %v1238_v34, %v1238_v34 }
  0xfb   : > { %v1099_v37 = vpop.f32.mrb[3].mxu1  ;;  %v1294_v46 = vmul.f32 %v1244_v36, %v1244_v36 }
  0xfd   : > { %v1252_v40 = vpop.f32.mrb[4].mxu0 }
  0xfe   : > { %731 = vrot.lane.b32.xlu1 %v1248_v38, %s1170_s5  ;;  %629 = vrot.lane.b32.xlu0 %v1250_v39, %s1170_s5  ;;  %v1077_v41 = vpop.f32.mrb[5].mxu0  ;;  %v1258_v42 = vpop.f32.mrb[4].mxu1  ;;  %v1286_v45 = vmul.f32 %v1252_v40, %v1252_v40 }
  0xff   : > { %v1102_v43 = vpop.f32.mrb[5].mxu1  ;;  %v1298_v47 = vmul.f32 %v1258_v42, %v1258_v42 }
 0x102   : > { %752 = vrot.lane.b32.xlu1 %v1248_v38, %s1169_s30  ;;  %650 = vrot.lane.b32.xlu0 %v1250_v39, %s1169_s30 }
 0x106   : > { %440 = vrot.lane.b32.xlu0 %v1238_v34, %s1170_s5  ;;  %442 = vrot.lane.b32.xlu1 %v1252_v40, %s1170_s5 }
 0x10a   : > { %538 = vrot.lane.b32.xlu0 %v1244_v36, %s1170_s5  ;;  %540 = vrot.lane.b32.xlu1 %v1258_v42, %s1170_s5 }
 0x10e   : > { %464 = vrot.lane.b32.xlu0 %v1238_v34, %s1169_s30  ;;  %466 = vrot.lane.b32.xlu1 %v1252_v40, %s1169_s30 }
 0x112   : > { %559 = vrot.lane.b32.xlu0 %v1244_v36, %s1169_s30  ;;  %561 = vrot.lane.b32.xlu1 %v1258_v42, %s1169_s30 }
 0x116   : > { %631 = vrot.lane.b32.xlu0 %v1282_v44, %s1170_s5  ;;  %633 = vrot.lane.b32.xlu1 %v1286_v45, %s1170_s5 }
 0x11a   : > { %733 = vrot.lane.b32.xlu0 %v1294_v46, %s1170_s5  ;;  %735 = vrot.lane.b32.xlu1 %v1298_v47, %s1170_s5 }
 0x11e   : > { %652 = vrot.lane.b32.xlu0 %v1282_v44, %s1169_s30  ;;  %654 = vrot.lane.b32.xlu1 %v1286_v45, %s1169_s30 }
 0x122   : > { %754 = vrot.lane.b32.xlu0 %v1294_v46, %s1169_s30  ;;  %756 = vrot.lane.b32.xlu1 %v1298_v47, %s1169_s30 }
 0x126   : > { %884 = vrot.lane.b32.xlu0 %v1236_v33, %s1170_s5  ;;  %891 = vrot.lane.b32.xlu1 %v1236_v33, %s1169_s30 }
 0x168   : > { %v463_v53 = vpop.permute.xlu1 %462  ;;  %v439_v54 = vpop.permute.xlu0 %438 }
 0x169   : > { %v472_v55 = vsel %vm471_vm2, %v463_v53, 0.0  ;;  %v448_v56 = vsel %vm447_vm3, 0.0, %v439_v54 }
 0x16a   : > { %v477_v57 = vsel %vm1317_vm4, %v472_v55, 0.0  ;;  %v453_v58 = vsel %vm1321_vm5, %v448_v56, 0.0 }
 0x16b   : > { %v456_v60 = vmul.f32 0.30780134, %v453_v58  ;;  %v480_v63 = vmul.f32 0.30780134, %v477_v57  ;;  %v433_v58 = vmul.f32 0.38439733, %v1238_v34 }
 0x16c   : > { %v558_v61 = vpop.permute.xlu1 %557  ;;  %v537_v62 = vpop.permute.xlu0 %536 }
 0x16d   : > { %v459_v0 = vadd.f32 %v456_v60, %v432_v59  ;;  %v566_v1 = vsel %vm471_vm2, %v558_v61, 0.0  ;;  %v545_v2 = vsel %vm447_vm3, 0.0, %v537_v62  ;;  %v434_v62 = vmul.f32 0.38439733, %v1252_v40 }
 0x16e   : > { %v569_v3 = vsel %vm1317_vm4, %v566_v1, 0.0  ;;  %v548_v4 = vsel %vm1321_vm5, %v545_v2, 0.0  ;;  %v531_v40 = vmul.f32 0.38439733, %v1244_v36 }
 0x16f   : > { %v551_v6 = vmul.f32 0.30780134, %v548_v4  ;;  %v1338_v7 = vadd.f32 %v480_v63, %v459_v0  ;;  %v572_v10 = vmul.f32 0.30780134, %v569_v3 }
 0x170   : > { %v732_v8 = vpop.permute.xlu1 %731  ;;  %v630_v9 = vpop.permute.xlu0 %629 }
 0x171   : > { %v554_v11 = vadd.f32 %v551_v6, %v530_v5  ;;  %v740_v12 = vsel %vm447_vm3, 0.0, %v732_v8  ;;  %v638_v13 = vsel %vm447_vm3, 0.0, %v630_v9  ;;  %492 = vrot.lane.b32.xlu0 %v1338_v7, %s1171_s6  ;;  %v532_v9 = vmul.f32 0.38439733, %v1258_v42 }
 0x172   : > { %v743_v14 = vsel %vm1321_vm5, %v740_v12, 0.0  ;;  %v641_v15 = vsel %vm1321_vm5, %v638_v13, 0.0 }
 0x173   : > { %v644_v16 = vmul.f32 0.30780134, %v641_v15  ;;  %v1348_v17 = vadd.f32 %v572_v10, %v554_v11  ;;  %v746_v20 = vmul.f32 0.30780134, %v743_v14 }
 0x174   : > { %v753_v18 = vpop.permute.xlu1 %752  ;;  %v651_v19 = vpop.permute.xlu0 %650 }
 0x175   : > { %v761_v22 = vsel %vm471_vm2, %v753_v18, 0.0  ;;  %v659_v23 = vsel %vm471_vm2, %v651_v19, 0.0  ;;  %511 = vrot.lane.b32.xlu0 %v1338_v7, %s1172_s7  ;;  %584 = vrot.lane.b32.xlu1 %v1348_v17, %s1171_s6  ;;  %v647_v27 = vadd.f32 %v644_v16, %v623_v21  ;;  %v749_v32 = vadd.f32 %v746_v20, %v725_v26 }
 0x176   : > { %v764_v24 = vsel %vm1317_vm4, %v761_v22, 0.0  ;;  %v662_v25 = vsel %vm1317_vm4, %v659_v23, 0.0 }
 0x177   : > { %v767_v28 = vmul.f32 0.30780134, %v764_v24  ;;  %v665_v29 = vmul.f32 0.30780134, %v662_v25 }
 0x178   : > { %v441_v30 = vpop.permute.xlu0 %440  ;;  %v443_v31 = vpop.permute.xlu1 %442 }
 0x179   : > { %v1362_v35 = vadd.f32 %v665_v29, %v647_v27  ;;  %v449_v37 = vsel %vm447_vm3, 0.0, %v441_v30  ;;  %v450_v39 = vsel %vm447_vm3, 0.0, %v443_v31  ;;  %602 = vrot.lane.b32.xlu1 %v1348_v17, %s1172_s7  ;;  %v1368_v41 = vadd.f32 %v767_v28, %v749_v32 }
 0x17a   : > { %v454_v38 = vsel %vm1321_vm5, %v449_v37, 0.0  ;;  %v455_v43 = vsel %vm1321_vm5, %v450_v39, 0.0 }
 0x17b   : > { %677 = vrot.lane.b32.xlu0 %v1362_v35, %s1171_s6  ;;  %v457_v55 = vmul.f32 0.30780134, %v454_v38  ;;  %v458_v56 = vmul.f32 0.30780134, %v455_v43  ;;  %v624_v43 = vmul.f32 0.38439733, %v1282_v44 }
 0x17c   : > { %v539_v49 = vpop.permute.xlu0 %538  ;;  %v541_v50 = vpop.permute.xlu1 %540 }
 0x17d   : > { %v546_v53 = vsel %vm447_vm3, 0.0, %v539_v49  ;;  %v547_v54 = vsel %vm447_vm3, 0.0, %v541_v50  ;;  %779 = vrot.lane.b32.xlu1 %v1368_v41, %s1171_s6  ;;  %v460_v1 = vadd.f32 %v457_v55, %v433_v58  ;;  %v461_v4 = vadd.f32 %v458_v56, %v434_v62 }
 0x17e   : > { %v549_v57 = vsel %vm1321_vm5, %v546_v53, 0.0  ;;  %v550_v59 = vsel %vm1321_vm5, %v547_v54, 0.0  ;;  %v625_v54 = vmul.f32 0.38439733, %v1286_v45  ;;  %v726_v45 = vmul.f32 0.38439733, %v1294_v46 }
 0x17f   : > { %695 = vrot.lane.b32.xlu0 %v1362_v35, %s1172_s7  ;;  %v552_v2 = vmul.f32 0.30780134, %v549_v57  ;;  %v553_v5 = vmul.f32 0.30780134, %v550_v59 }
 0x180   : > { %v465_v60 = vpop.permute.xlu0 %464  ;;  %v467_v61 = vpop.permute.xlu1 %466 }
 0x181   : > { %v473_v63 = vsel %vm471_vm2, %v465_v60, 0.0  ;;  %v474_v0 = vsel %vm471_vm2, %v467_v61, 0.0  ;;  %797 = vrot.lane.b32.xlu1 %v1368_v41, %s1172_s7  ;;  %v555_v19 = vadd.f32 %v552_v2, %v531_v40  ;;  %v556_v36 = vadd.f32 %v553_v5, %v532_v9 }
 0x182   : > { %v478_v3 = vsel %vm1317_vm4, %v473_v63, 0.0  ;;  %v479_v34 = vsel %vm1317_vm4, %v474_v0, 0.0  ;;  %v727_v0 = vmul.f32 0.38439733, %v1298_v47 }
 0x183   : > { %v481_v6 = vmul.f32 0.30780134, %v478_v3  ;;  %v482_v8 = vmul.f32 0.30780134, %v479_v34 }
 0x184   : > { %v560_v10 = vpop.permute.xlu0 %559  ;;  %v562_v11 = vpop.permute.xlu1 %561 }
 0x185   : > { %v1398_v12 = vadd.f32 %v481_v6, %v460_v1  ;;  %v1400_v13 = vadd.f32 %v482_v8, %v461_v4  ;;  %v567_v14 = vsel %vm471_vm2, %v560_v10, 0.0  ;;  %v568_v15 = vsel %vm471_vm2, %v562_v11, 0.0 }
 0x186   : > { %v570_v16 = vsel %vm1317_vm4, %v567_v14, 0.0  ;;  %v571_v18 = vsel %vm1317_vm4, %v568_v15, 0.0 }
 0x187   : > { %v573_v20 = vmul.f32 0.30780134, %v570_v16  ;;  %v574_v42 = vmul.f32 0.30780134, %v571_v18  ;;  %494 = vrot.lane.b32.xlu0 %v1398_v12, %s1171_s6  ;;  %496 = vrot.lane.b32.xlu1 %v1400_v13, %s1171_s6 }
 0x188   : > { %v632_v21 = vpop.permute.xlu0 %631  ;;  %v634_v22 = vpop.permute.xlu1 %633 }
 0x189   : > { %v1412_v23 = vadd.f32 %v573_v20, %v555_v19  ;;  %v1414_v24 = vadd.f32 %v574_v42, %v556_v36  ;;  %v639_v25 = vsel %vm447_vm3, 0.0, %v632_v21  ;;  %v640_v26 = vsel %vm447_vm3, 0.0, %v634_v22 }
 0x18a   : > { %v642_v27 = vsel %vm1321_vm5, %v639_v25, 0.0  ;;  %v643_v28 = vsel %vm1321_vm5, %v640_v26, 0.0  ;;  %v882_v20 = vmul.f32 0.38439733, %v1236_v33 }
 0x18b   : > { %586 = vrot.lane.b32.xlu0 %v1412_v23, %s1171_s6  ;;  %588 = vrot.lane.b32.xlu1 %v1414_v24, %s1171_s6  ;;  %v645_v37 = vmul.f32 0.30780134, %v642_v27  ;;  %v646_v39 = vmul.f32 0.30780134, %v643_v28 }
 0x18c   : > { %v734_v29 = vpop.permute.xlu0 %733  ;;  %v736_v30 = vpop.permute.xlu1 %735 }
 0x18d   : > { %v741_v31 = vsel %vm447_vm3, 0.0, %v734_v29  ;;  %v742_v32 = vsel %vm447_vm3, 0.0, %v736_v30  ;;  %v648_v57 = vadd.f32 %v645_v37, %v624_v43  ;;  %v649_v44 = vadd.f32 %v646_v39, %v625_v54 }
 0x18e   : > { %v744_v38 = vsel %vm1321_vm5, %v741_v31, 0.0  ;;  %v745_v49 = vsel %vm1321_vm5, %v742_v32, 0.0  ;;  %v486_v31 = vmul.f32 0.38439733, %v1338_v7  ;;  %v578_v37 = vmul.f32 0.38439733, %v1348_v17 }
 0x18f   : > { %513 = vrot.lane.b32.xlu0 %v1398_v12, %s1172_s7  ;;  %515 = vrot.lane.b32.xlu1 %v1400_v13, %s1172_s7  ;;  %v747_v58 = vmul.f32 0.30780134, %v744_v38  ;;  %v748_v61 = vmul.f32 0.30780134, %v745_v49  ;;  %v671_v7 = vmul.f32 0.38439733, %v1362_v35 }
 0x190   : > { %v653_v50 = vpop.permute.xlu0 %652  ;;  %v655_v53 = vpop.permute.xlu1 %654  ;;  %v825_v35 = vshrl.u32 %v416_v48, 7 }
 0x191   : > { %v660_v55 = vsel %vm471_vm2, %v653_v50, 0.0  ;;  %v661_v56 = vsel %vm471_vm2, %v655_v53, 0.0  ;;  %v750_v40 = vadd.f32 %v747_v58, %v726_v45  ;;  %v751_v46 = vadd.f32 %v748_v61, %v727_v0 }
 0x192   : > { %v663_v59 = vsel %vm1317_vm4, %v660_v55, 0.0  ;;  %v664_v60 = vsel %vm1317_vm4, %v661_v56, 0.0  ;;  %vm828_vm8 = vcmp.eq.s32.totalorder %v825_v35, 0 }
 0x193   : > { %v666_v62 = vmul.f32 0.30780134, %v663_v59  ;;  %v667_v63 = vmul.f32 0.30780134, %v664_v60  ;;  %604 = vrot.lane.b32.xlu0 %v1412_v23, %s1172_s7  ;;  %606 = vrot.lane.b32.xlu1 %v1414_v24, %s1172_s7 }
 0x194   : > { %v755_v1 = vpop.permute.xlu0 %754  ;;  %v757_v2 = vpop.permute.xlu1 %756 }
 0x195   : > { %v1450_v3 = vadd.f32 %v666_v62, %v648_v57  ;;  %v1452_v34 = vadd.f32 %v667_v63, %v649_v44  ;;  %v762_v4 = vsel %vm471_vm2, %v755_v1, 0.0  ;;  %v763_v5 = vsel %vm471_vm2, %v757_v2, 0.0 }
 0x196   : > { %v765_v6 = vsel %vm1317_vm4, %v762_v4, 0.0  ;;  %v766_v8 = vsel %vm1317_vm4, %v763_v5, 0.0  ;;  %v773_v63 = vmul.f32 0.38439733, %v1368_v41 }
 0x197   : > { %v768_v9 = vmul.f32 0.30780134, %v765_v6  ;;  %v769_v47 = vmul.f32 0.30780134, %v766_v8  ;;  %679 = vrot.lane.b32.xlu0 %v1450_v3, %s1171_s6  ;;  %681 = vrot.lane.b32.xlu1 %v1452_v34, %s1171_s6 }
 0x198   : > { %v885_v10 = vpop.permute.xlu0 %884  ;;  %v892_v18 = vpop.permute.xlu1 %891 }
 0x199   : > { %v1464_v11 = vadd.f32 %v768_v9, %v750_v40  ;;  %v1466_v14 = vadd.f32 %v769_v47, %v751_v46  ;;  %v887_v15 = vsel %vm447_vm3, 0.0, %v885_v10  ;;  %v894_v36 = vsel %vm471_vm2, %v892_v18, 0.0 }
 0x19a   : > { %v888_v16 = vsel %vm1321_vm5, %v887_v15, 0.0  ;;  %v895_v52 = vsel %vm1317_vm4, %v894_v36, 0.0 }
 0x19b   : > { %781 = vrot.lane.b32.xlu0 %v1464_v11, %s1171_s6  ;;  %783 = vrot.lane.b32.xlu1 %v1466_v14, %s1171_s6  ;;  %v889_v19 = vmul.f32 0.30780134, %v888_v16  ;;  %v896_v21 = vmul.f32 0.30780134, %v895_v52 }
 0x19d   : > { %v890_v42 = vadd.f32 %v889_v19, %v882_v20  ;;  %v1173_v20 = vmov 300.0  }
 0x19e   : > { %v831_v52 = vsel %vm828_vm8, 1000.0, %v1173_v20 }
 0x19f   : > { %697 = vrot.lane.b32.xlu0 %v1450_v3, %s1172_s7  ;;  %699 = vrot.lane.b32.xlu1 %v1452_v34, %s1172_s7  ;;  %v1487_v22 = vadd.f32 %v896_v21, %v890_v42 }
 0x1a3   : > { %799 = vrot.lane.b32.xlu0 %v1464_v11, %s1172_s7  ;;  %801 = vrot.lane.b32.xlu1 %v1466_v14, %s1172_s7 }
 0x1a7   : > { %900 = vrot.lane.b32.xlu0 %v1487_v22, %s1171_s6  ;;  %906 = vrot.lane.b32.xlu1 %v1487_v22, %s1172_s7 }
 0x1e3   : > { %v493_v33 = vpop.permute.xlu0 %492 }
 0x1e4   : > { %v502_v51 = vsel %vm501_vm6, 0.0, %v493_v33 }
 0x1e5   : > { %v505_v29 = vmul.f32 0.30780134, %v502_v51 }
 0x1e7   : > { %v512_v25 = vpop.permute.xlu0 %511  ;;  %v585_v26 = vpop.permute.xlu1 %584  ;;  %v508_v43 = vadd.f32 %v505_v29, %v486_v31  ;;  %v579_v29 = vmul.f32 0.38439733, %v1412_v23  ;;  %v580_v31 = vmul.f32 0.38439733, %v1414_v24  ;;  %v673_v23 = vmul.f32 0.38439733, %v1452_v34 }
 0x1e8   : > { %v521_v27 = vsel %vm520_vm7, %v512_v25, 0.0  ;;  %v593_v28 = vsel %vm501_vm6, 0.0, %v585_v26 }
 0x1e9   : > { %v596_v30 = vmul.f32 0.30780134, %v593_v28  ;;  %v524_v32 = vmul.f32 0.30780134, %v521_v27  ;;  %v487_v27 = vmul.f32 0.38439733, %v1398_v12 }
 0x1ea   : > { %v488_v28 = vmul.f32 0.38439733, %v1400_v13 }
 0x1eb   : > { %v603_v39 = vpop.permute.xlu1 %602  ;;  %v599_v49 = vadd.f32 %v596_v30, %v578_v37  ;;  %v527_v55 = vadd.f32 %v524_v32, %v508_v43  ;;  %v672_v37 = vmul.f32 0.38439733, %v1450_v3 }
 0x1ec   : > { %v611_v38 = vsel %vm520_vm7, %v603_v39, 0.0 }
 0x1ed   : > { %v614_v50 = vmul.f32 0.30780134, %v611_v38  ;;  %v678_v53 = vpop.permute.xlu0 %677  ;;  %v713_v2 = vmul.f32 %v527_v55, %v527_v55 }
 0x1ee   : > { %v686_v54 = vsel %vm501_vm6, 0.0, %v678_v53 }
 0x1ef   : > { %v617_v56 = vadd.f32 %v614_v50, %v599_v49  ;;  %v689_v57 = vmul.f32 0.30780134, %v686_v54  ;;  %v780_v58 = vpop.permute.xlu1 %779 }
 0x1f0   : > { %v788_v59 = vsel %vm501_vm6, 0.0, %v780_v58 }
 0x1f1   : > { %v1501_v60 = vmul.f32 %v617_v56, %v527_v55  ;;  %v791_v17 = vmul.f32 0.30780134, %v788_v59  ;;  %v696_v44 = vpop.permute.xlu0 %695  ;;  %v692_v62 = vadd.f32 %v689_v57, %v671_v7  ;;  %v815_v8 = vmul.f32 %v617_v56, %v617_v56 }
 0x1f2   : > { %v704_v61 = vsel %vm520_vm7, %v696_v44, 0.0 }
 0x1f3   : > { %v707_v45 = vmul.f32 0.30780134, %v704_v61  ;;  %v798_v0 = vpop.permute.xlu1 %797  ;;  %v794_v4 = vadd.f32 %v791_v17, %v773_v63 }
 0x1f4   : > { %v806_v1 = vsel %vm520_vm7, %v798_v0, 0.0 }
 0x1f5   : > { %v710_v5 = vadd.f32 %v707_v45, %v692_v62  ;;  %v809_v6 = vmul.f32 0.30780134, %v806_v1 }
 0x1f7   : > { %v716_v40 = vsub.f32 %v710_v5, %v713_v2  ;;  %v812_v46 = vadd.f32 %v809_v6, %v794_v4 }
 0x1f9   : > { %v818_v9 = vsub.f32 %v812_v46, %v815_v8  ;;  %v495_v47 = vpop.permute.xlu0 %494  ;;  %v497_v10 = vpop.permute.xlu1 %496  ;;  %v719_v15 = vmax.f32 %v716_v40, 0.0 }
 0x1fa   : > { %v503_v48 = vsel %vm501_vm6, 0.0, %v495_v47  ;;  %v504_v26 = vsel %vm501_vm6, 0.0, %v497_v10 }
 0x1fb   : > { %v821_v16 = vmax.f32 %v818_v9, 0.0  ;;  %v506_v38 = vmul.f32 0.30780134, %v503_v48  ;;  %v507_v43 = vmul.f32 0.30780134, %v504_v26 }
 0x1fc   : > { %v775_v48 = vmul.f32 0.38439733, %v1466_v14 }
 0x1fd   : > { %v834_v41 = vmul.f32 %v821_v16, %v719_v15  ;;  %v864_v18 = vadd.f32 %v821_v16, %v719_v15  ;;  %v587_v19 = vpop.permute.xlu0 %586  ;;  %v589_v36 = vpop.permute.xlu1 %588  ;;  %v509_v7 = vadd.f32 %v506_v38, %v487_v27  ;;  %v510_v17 = vadd.f32 %v507_v43, %v488_v28 }
 0x1fe   : > { %v594_v30 = vsel %vm501_vm6, 0.0, %v587_v19  ;;  %v595_v13 = vsel %vm501_vm6, 0.0, %v589_v36 }
 0x1ff   : > { %1144 = vrsqrt.f32 %v834_v41  ;;  %v867_v33 = vadd.f32 %v864_v18, %v831_v52  ;;  %vm839_vm9 = vcmp.eq.f32.partialorder %v834_v41, inf  ;;  %vm841_vm10 = vcmp.eq.f32.partialorder %v834_v41, 0.0 }
 0x200   : > { %v842_v24 = vand.u32 2147483648, %v834_v41  ;;  %v597_v54 = vmul.f32 0.30780134, %v594_v30  ;;  %v598_v44 = vmul.f32 0.30780134, %v595_v13 }
 0x201   : > { %v514_v42 = vpop.permute.xlu0 %513  ;;  %v516_v21 = vpop.permute.xlu1 %515  ;;  %1146 = vrcp.f32 %v867_v33 }
 0x202   : > { %v522_v32 = vsel %vm520_vm7, %v514_v42, 0.0  ;;  %v523_v49 = vsel %vm520_vm7, %v516_v21, 0.0  ;;  %v600_v6 = vadd.f32 %v597_v54, %v579_v29  ;;  %v601_v35 = vadd.f32 %v598_v44, %v580_v31 }
 0x203   : > { %v525_v55 = vmul.f32 0.30780134, %v522_v32  ;;  %v526_v3 = vmul.f32 0.30780134, %v523_v49 }
 0x205   : > { %v605_v51 = vpop.permute.xlu0 %604  ;;  %v607_v25 = vpop.permute.xlu1 %606  ;;  %v528_v8 = vadd.f32 %v525_v55, %v509_v7  ;;  %v529_v40 = vadd.f32 %v526_v3, %v510_v17  ;;  %v898_v55 = vmul.f32 0.38439733, %v1487_v22 }
 0x206   : > { %v612_v34 = vsel %vm520_vm7, %v605_v51, 0.0  ;;  %v613_v45 = vsel %vm520_vm7, %v607_v25, 0.0  ;;  %v774_v25 = vmul.f32 0.38439733, %v1464_v11 }
 0x207   : > { %v615_v9 = vmul.f32 0.30780134, %v612_v34  ;;  %v616_v47 = vmul.f32 0.30780134, %v613_v45  ;;  %v714_v33 = vmul.f32 %v528_v8, %v528_v8  ;;  %v715_v51 = vmul.f32 %v529_v40, %v529_v40 }
 0x209   : > { %v1145_v39 = vpop.eup %1144  ;;  %v680_v50 = vpop.permute.xlu0 %679  ;;  %v618_v26 = vadd.f32 %v615_v9, %v600_v6  ;;  %v619_v27 = vadd.f32 %v616_v47, %v601_v35 }
 0x20a   : > { %v682_v12 = vpop.permute.xlu1 %681  ;;  %v838_v53 = vmul.f32 %v1145_v39, %v834_v41  ;;  %v687_v57 = vsel %vm501_vm6, 0.0, %v680_v50 }
 0x20b   : > { %v688_v58 = vsel %vm501_vm6, 0.0, %v682_v12  ;;  %v690_v1 = vmul.f32 0.30780134, %v687_v57  ;;  %v1147_v46 = vpop.eup %1146  ;;  %v816_v11 = vmul.f32 %v618_v26, %v618_v26  ;;  %v817_v13 = vmul.f32 %v619_v27, %v619_v27 }
 0x20c   : > { %v840_v56 = vsel %vm839_vm9, %v834_v41, %v838_v53  ;;  %v691_v2 = vmul.f32 0.30780134, %v688_v58 }
 0x20d   : > { %v843_v59 = vsel %vm841_vm10, %v842_v24, %v840_v56  ;;  %v782_v61 = vpop.permute.xlu0 %781  ;;  %v693_v20 = vadd.f32 %v690_v1, %v672_v37 }
 0x20e   : > { %v784_v62 = vpop.permute.xlu1 %783  ;;  %v858_v63 = vmul.f32 2.0, %v843_v59  ;;  %v789_v0 = vsel %vm501_vm6, 0.0, %v782_v61  ;;  %v915_v53 = vadd.f32 1000.0, %v843_v59 }
 0x20f   : > { %v790_v4 = vsel %vm501_vm6, 0.0, %v784_v62  ;;  %v792_v10 = vmul.f32 0.30780134, %v789_v0 }
 0x210   : > { %v861_v5 = vadd.f32 %v858_v63, %v831_v52  ;;  %v793_v18 = vmul.f32 0.30780134, %v790_v4  ;;  %v694_v52 = vadd.f32 %v691_v2, %v673_v23  ;;  %1148 = vrcp.f32 %v915_v53 }
 0x211   : > { %v698_v15 = vpop.permute.xlu0 %697  ;;  %v795_v32 = vadd.f32 %v792_v10, %v774_v25 }
 0x212   : > { %v700_v16 = vpop.permute.xlu1 %699  ;;  %v873_v41 = vmul.f32 %v1147_v46, %v861_v5  ;;  %v705_v19 = vsel %vm520_vm7, %v698_v15, 0.0  ;;  %v796_v39 = vadd.f32 %v793_v18, %v775_v48 }
 0x213   : > { %v706_v36 = vsel %vm520_vm7, %v700_v16, 0.0  ;;  %v708_v42 = vmul.f32 0.30780134, %v705_v19 }
 0x214   : > { %v709_v21 = vmul.f32 0.30780134, %v706_v36  ;;  %877 = vst.msk [vmem:[%s1530_s11] sm:$0xff] %vm876_vm11, %v873_v41 }
 0x215   : > { %v711_v28 = vadd.f32 %v708_v42, %v693_v20  ;;  %v800_v30 = vpop.permute.xlu0 %799 }
 0x216   : > { %v712_v29 = vadd.f32 %v709_v21, %v694_v52  ;;  %v802_v31 = vpop.permute.xlu1 %801  ;;  %v807_v37 = vsel %vm520_vm7, %v800_v30, 0.0 }
 0x217   : > { %v808_v38 = vsel %vm520_vm7, %v802_v31, 0.0  ;;  %v717_v43 = vsub.f32 %v711_v28, %v714_v33  ;;  %v810_v50 = vmul.f32 0.30780134, %v807_v37 }
 0x218   : > { %v718_v49 = vsub.f32 %v712_v29, %v715_v51  ;;  %v811_v12 = vmul.f32 0.30780134, %v808_v38 }
 0x219   : > { %v813_v14 = vadd.f32 %v810_v50, %v795_v32  ;;  %v901_v24 = vpop.permute.xlu0 %900  ;;  %v720_v17 = vmax.f32 %v717_v43, 0.0 }
 0x21a   : > { %v814_v23 = vadd.f32 %v811_v12, %v796_v39  ;;  %v907_v54 = vpop.permute.xlu1 %906  ;;  %v903_v56 = vsel %vm501_vm6, 0.0, %v901_v24  ;;  %v721_v44 = vmax.f32 %v718_v49, 0.0  ;;  %v1149_v6 = vpop.eup %1148 }
 0x21b   : > { %v819_v3 = vsub.f32 %v813_v14, %v816_v11  ;;  %v904_v58 = vmul.f32 0.30780134, %v903_v56  ;;  %v909_v7 = vsel %vm520_vm7, %v907_v54, 0.0 }
 0x21c   : > { %v820_v57 = vsub.f32 %v814_v23, %v817_v13  ;;  %v910_v63 = vmul.f32 0.30780134, %v909_v7 }
 0x21d   : > { %v822_v61 = vmax.f32 %v819_v3, 0.0  ;;  %v905_v62 = vadd.f32 %v904_v58, %v898_v55 }
 0x21e   : > { %v823_v59 = vmax.f32 %v820_v57, 0.0 }
 0x21f   : > { %v835_v34 = vmul.f32 %v822_v61, %v720_v17  ;;  %v865_v45 = vadd.f32 %v822_v61, %v720_v17  ;;  %v911_v22 = vadd.f32 %v910_v63, %v905_v62 }
 0x220   : > { %v836_v0 = vmul.f32 %v823_v59, %v721_v44  ;;  %v866_v1 = vadd.f32 %v823_v59, %v721_v44 }
 0x221   : > { %1150 = vrsqrt.f32 %v835_v34  ;;  %v913_v2 = vsub.f32 %v911_v22, %v1501_v60  ;;  %v868_v4 = vadd.f32 300.0, %v865_v45  ;;  %vm846_vm13 = vcmp.eq.f32.partialorder %v835_v34, inf }
 0x222   : > { %1152 = vrsqrt.f32 %v836_v0  ;;  %v869_v8 = vadd.f32 300.0, %v866_v1  ;;  %v849_v47 = vand.u32 2147483648, %v835_v34  ;;  %vm848_vm14 = vcmp.eq.f32.partialorder %v835_v34, 0.0 }
 0x223   : > { %v914_v5 = vadd.f32 1000.0, %v913_v2  ;;  %1154 = vrcp.f32 %v868_v4  ;;  %vm853_vm15 = vcmp.eq.f32.partialorder %v836_v0, inf  ;;  %v856_v15 = vand.u32 2147483648, %v836_v0 }
 0x224   : > { %1156 = vrcp.f32 %v869_v8  ;;  %vm855_vm0 = vcmp.eq.f32.partialorder %v836_v0, 0.0 }
 0x225   : > { %v917_v40 = vmul.f32 %v1149_v6, %v914_v5 }
 0x227   : > { %918 = vst.msk [vmem:[%s226_s14] sm:$0x1] %vm879_vm12, %v917_v40 }
 0x22b   : > { %v1151_v46 = vpop.eup %1150 }
 0x22c   : > { %v1153_v35 = vpop.eup %1152  ;;  %v845_v9 = vmul.f32 %v1151_v46, %v835_v34 }
 0x22d   : > { %v852_v60 = vmul.f32 %v1153_v35, %v836_v0  ;;  %v1155_v52 = vpop.eup %1154 }
 0x22e   : > { %v847_v10 = vsel %vm846_vm13, %v835_v34, %v845_v9  ;;  %v1157_v21 = vpop.eup %1156 }
 0x22f   : > { %v850_v16 = vsel %vm848_vm14, %v849_v47, %v847_v10  ;;  %v854_v41 = vsel %vm853_vm15, %v836_v0, %v852_v60 }
 0x230   : > { %v859_v18 = vmul.f32 2.0, %v850_v16  ;;  %v857_v19 = vsel %vm855_vm0, %v856_v15, %v854_v41 }
 0x231   : > { %v860_v36 = vmul.f32 2.0, %v857_v19 }
 0x232   : > { %v862_v20 = vadd.f32 300.0, %v859_v18 }
 0x233   : > { %v863_v42 = vadd.f32 300.0, %v860_v36 }
 0x234   : > { %v874_v33 = vmul.f32 %v1155_v52, %v862_v20 }
 0x235   : > { %v875_v51 = vmul.f32 %v1157_v21, %v863_v42 }
 0x236   : > { %878 = vst.msk [vmem:[%s1530_s11 + $0x8] sm:$0xff] %vm876_vm11, %v874_v33 }
 0x237   : > { %880 = vst.msk [vmem:[%s1530_s11 + $0x10] sm:$0x1] %vm879_vm12, %v875_v51 }
 0x238 PF: > { %s15_s15 = sadd.s32 1, %s1164_s15  }
 0x239   : > { %p12_p4 = scmp.ge.s32.totalorder %s15_s15, 4  }
 0x23b   :  { %14 = sbr.rel (!%p12_p4) target bundleno = 1 (0x1), region = 77 }

</bundles_post_ra>
